<compile_context>
chip_gen: v5e
topology: v5e:2x2
jax: 0.10.0
libtpu: 0.0.40
codegen_flags: <defaults>
</compile_context>

<pallas_src>
import functools

import jax
import jax.numpy as jnp
from jax.experimental import pallas as pl
from jax.experimental.pallas import tpu as pltpu


def _fused_rgcn_kernel(a_ref, x_ref, w1_ref, lw1_ref, b1_ref,
                       w2_ref, lw2_ref, b2_ref, out_ref, *, r_rels):
    """Fused 2-layer RGCN ('bdd' regularizer, self-loop) on a dense per-relation graph.

    a_ref   : (R, N, N)    f32   A[r, dst, src] = edge norm (1/in-degree)
    x_ref   : (N, Hp)      f32   lane-padded input features
    w*_ref  : (R, Hp, Hp)  f32   dense block-diagonal 'bdd' weights, lane padded
    lw*_ref : (Hp, Hp)     f32   dense self-loop weight, lane padded
    b*_ref  : (1, Hp)      f32   bias, lane padded
    out_ref : (N, Hp)      f32
    """

    def layer(x, w_ref, lw_ref, bias_ref):
        # self-loop term + bias (f32 accumulate)
        acc = jnp.dot(x, lw_ref[...], preferred_element_type=jnp.float32)
        acc = acc + bias_ref[...]
        # Per-relation message + aggregation, accumulated in registers.
        # r is a Python int -> static leading-axis ref loads, fully unrolled.
        for r in range(r_rels):
            m_r = jnp.dot(x, w_ref[r], preferred_element_type=jnp.float32)
            acc = acc + jnp.dot(a_ref[r], m_r, preferred_element_type=jnp.float32)
        return acc

    h = jnp.maximum(layer(x_ref[...], w1_ref, lw1_ref, b1_ref), 0.0)
    # TODO(synk): nn.Dropout(0.2) is train-mode stochastic; eval-mode identity here.
    out_ref[...] = layer(h, w2_ref, lw2_ref, b2_ref)


def fused_rgcn_forward(a, x_pad, w1, lw1, b1, w2, lw2, b2):
    """Single fused pallas_call for both RelGraphConv layers (gridless, all-VMEM).

    For larger subgraphs: add grid=(cdiv(N, tile_n),) over dst rows with
    dimension_semantics=("parallel",) (v7x: 2 TCs), keep the relation loop inside
    each tile, and keep the VMEM budget under ~48 MiB on v7x (64 MiB physical).
    """
    n, hp = x_pad.shape
    r_rels = a.shape[0]
    kernel = functools.partial(_fused_rgcn_kernel, r_rels=r_rels)
    vmem = lambda: pl.BlockSpec(memory_space=pltpu.MemorySpace.VMEM)

    # 2 layers x (self-loop matmul + per-relation message + aggregation matmuls).
    flops = 2 * (2 * n * hp * hp + r_rels * (2 * n * hp * hp + 2 * n * n * hp))
    bytes_accessed = 4 * (a.size + x_pad.size + w1.size + lw1.size + b1.size
                          + w2.size + lw2.size + b2.size + n * hp)

    return pl.pallas_call(
        kernel,
        out_shape=jax.ShapeDtypeStruct((n, hp), jnp.float32),
        in_specs=[vmem() for _ in range(8)],
        out_specs=vmem(),
        cost_estimate=pl.CostEstimate(flops=flops, transcendentals=0,
                                      bytes_accessed=bytes_accessed),
    )(a, x_pad, w1, lw1, b1, w2, lw2, b2)


def bdd_to_dense_padded(w_bdd, hp):
    """'bdd' weights (R, B, S, S) -> dense block-diagonal (R, Hp, Hp), lane padded.

    Host-side, one-time expansion: R*Hp*Hp f32 = 512 KiB per layer at these sizes.
    Keeping the expansion out of the kernel removes all in-kernel VALU mask work.
    """
    r_rels, b_blk, s_blk, _ = w_bdd.shape
    w = jnp.zeros((r_rels, hp, hp), w_bdd.dtype)
    for b in range(b_blk):
        sl = slice(b * s_blk, (b + 1) * s_blk)
        w = w.at[:, sl, sl].set(w_bdd[:, b])
    return w


def pad_cols(x, hp):
    n, h = x.shape
    return jnp.zeros((n, hp), x.dtype).at[:, :h].set(x)


def pad_square(w, hp):
    h = w.shape[0]
    return jnp.zeros((hp, hp), w.dtype).at[:h, :h].set(w)


def link_predict_forward(params, graph, nids):
    """JAX wrapper: embedding gather + adjacency scatter around the fused Pallas kernel."""
    src, dst, etype, norm = graph
    x = params["emb"][nids]                               # (N, H) f32
    n, h_dim = x.shape
    r_rels, hp = params["w1"].shape[0], params["w1"].shape[1]
    x_pad = jnp.zeros((n, hp), jnp.float32).at[:, :h_dim].set(x)
    # Dense per-relation adjacency with edge norms, built directly in the
    # kernel's (R, N, N) layout — single scatter, no transpose/reshape/cast pass.
    # TODO(synk): dense per-relation adjacency is a toy-scale choice; real graphs want a
    #             sparse (CSR / segment-sum) formulation instead of R dense (N, N) blocks.
    a = jnp.zeros((r_rels, n, n), jnp.float32).at[etype, dst, src].add(norm)
    out = fused_rgcn_forward(a, x_pad,
                             params["w1"], params["lw1"], params["bias1"],
                             params["w2"], params["lw2"], params["bias2"])
    return out[:, :h_dim]


def reference_forward(raw, graph, nids, n, r_rels):
    """Pure-JAX f32 dense-blockdiag reference (highest matmul precision)."""
    src, dst, etype, norm = graph
    A = jnp.zeros((r_rels, n, n), jnp.float32).at[etype, dst, src].add(norm)

    def dense_bdd(w):
        rr, b_blk, s_blk, _ = w.shape
        h = b_blk * s_blk
        wd = jnp.zeros((rr, h, h), w.dtype)
        for b in range(b_blk):
            sl = slice(b * s_blk, (b + 1) * s_blk)
            wd = wd.at[:, sl, sl].set(w[:, b])
        return wd

    hi = jax.lax.Precision.HIGHEST

    def layer(x, w_bdd, lw, bias):
        msg = jnp.einsum("nk,rkh->rnh", x, dense_bdd(w_bdd), precision=hi)
        agg = jnp.einsum("rds,rsh->dh", A, msg, precision=hi)
        sl = jnp.dot(x, lw, precision=hi)
        return agg + sl + bias

    x = raw["emb"][nids]
    h1 = jnp.maximum(layer(x, raw["w1_bdd"], raw["loop_w1"], raw["bias1"]), 0.0)
    return layer(h1, raw["w2_bdd"], raw["loop_w2"], raw["bias2"])


if __name__ == "__main__":
    key = jax.random.PRNGKey(0)

    # Small shapes consistent with the module (original: h_dim=500, num_bases=100).
    num_nodes = 128        # embedding table size
    N = 64                 # nodes in the sampled subgraph
    num_rels = 4
    R = num_rels * 2       # RGCN uses num_rels * 2 relations (inverse edges)
    H = 32                 # h_dim
    B = 8                  # num_bases ('bdd'), H % B == 0
    S = H // B             # block size (real model: 500 / 100 = 5)
    HP = 128               # lane-padded hidden width
    E = 256                # number of edges

    ks = jax.random.split(key, 10)

    def xavier(k, shape, fan_in, fan_out, gain=1.0):
        limit = gain * (6.0 / (fan_in + fan_out)) ** 0.5
        return jax.random.uniform(k, shape, jnp.float32, -limit, limit)

    emb = jax.random.normal(ks[0], (num_nodes, H), jnp.float32)    # nn.Embedding ~ N(0,1)
    w1_bdd = xavier(ks[1], (R, B, S, S), S, S)                     # conv1 'bdd' weight
    w2_bdd = xavier(ks[2], (R, B, S, S), S, S)                     # conv2 'bdd' weight
    loop_w1 = xavier(ks[3], (H, H), H, H)                          # conv1 self-loop weight
    loop_w2 = xavier(ks[4], (H, H), H, H)                          # conv2 self-loop weight
    bias1 = jnp.zeros((1, H), jnp.float32)                         # DGL inits bias to zeros
    bias2 = jnp.zeros((1, H), jnp.float32)
    _w_relation = xavier(ks[5], (num_rels, H), num_rels, H, gain=2.0 ** 0.5)  # unused in fwd

    # synthetic sampled graph: edge lists with 1/in-degree norms (g.edata['norm'])
    src = jax.random.randint(ks[6], (E,), 0, N)
    dst = jax.random.randint(ks[7], (E,), 0, N)
    etype = jax.random.randint(ks[8], (E,), 0, R)
    in_deg = jnp.zeros((N,), jnp.float32).at[dst].add(1.0)
    norm = 1.0 / jnp.maximum(in_deg[dst], 1.0)
    graph = (src, dst, etype, norm)

    nids = jax.random.randint(ks[9], (N,), 0, num_nodes)

    # kernel-side parameters: host-expanded dense 'bdd' weights + lane-padded pieces
    params = dict(
        emb=emb,
        w1=bdd_to_dense_padded(w1_bdd, HP),
        w2=bdd_to_dense_padded(w2_bdd, HP),
        lw1=pad_square(loop_w1, HP),
        lw2=pad_square(loop_w2, HP),
        bias1=pad_cols(bias1, HP),
        bias2=pad_cols(bias2, HP),
    )

    out = jax.jit(link_predict_forward)(params, graph, nids)
    out = jax.block_until_ready(out)
    assert out.shape == (N, H) and out.dtype == jnp.float32

    raw = dict(emb=emb, w1_bdd=w1_bdd, w2_bdd=w2_bdd, loop_w1=loop_w1,
               loop_w2=loop_w2, bias1=bias1, bias2=bias2)
    ref = reference_forward(raw, graph, nids, N, R)
    if not jnp.allclose(out, ref, rtol=5e-2, atol=5e-2):
        max_err = float(jnp.max(jnp.abs(out - ref)))
        raise AssertionError(f"kernel does not match reference (max abs err = {max_err})")
    print("KERNEL_OK")
</pallas_src>

<mosaic_0001>
module attributes {stable_mosaic.version = 11 : i64} {
  func.func @_fused_rgcn_kernel(%arg0: memref<8x64x64xf32, #tpu.memory_space<vmem>>, %arg1: memref<64x128xf32, #tpu.memory_space<vmem>>, %arg2: memref<8x128x128xf32, #tpu.memory_space<vmem>>, %arg3: memref<128x128xf32, #tpu.memory_space<vmem>>, %arg4: memref<1x128xf32, #tpu.memory_space<vmem>>, %arg5: memref<8x128x128xf32, #tpu.memory_space<vmem>>, %arg6: memref<128x128xf32, #tpu.memory_space<vmem>>, %arg7: memref<1x128xf32, #tpu.memory_space<vmem>>, %arg8: memref<64x128xf32, #tpu.memory_space<vmem>>) attributes {dimension_semantics = [], scalar_prefetch = 0 : i64, scratch_operands = 0 : i64, tpu.core_type = #tpu.core_type<tc>} {
    %c0 = arith.constant 0 : index
    %c0_0 = arith.constant 0 : index
    %0 = vector.load %arg1[%c0, %c0_0] : memref<64x128xf32, #tpu.memory_space<vmem>>, vector<64x128xf32>
    %c0_1 = arith.constant 0 : index
    %c0_2 = arith.constant 0 : index
    %1 = vector.load %arg3[%c0_1, %c0_2] : memref<128x128xf32, #tpu.memory_space<vmem>>, vector<128x128xf32>
    %cst = arith.constant dense<0.000000e+00> : vector<64x128xf32>
    %2 = tpu.matmul %0, %1, %cst {dimension_numbers = #tpu.dot_dimension_numbers<[1], [0], [0], [1], [0, 0, 1, 1], [], []>} : vector<64x128xf32>, vector<128x128xf32>, vector<64x128xf32> -> vector<64x128xf32>
    %c0_3 = arith.constant 0 : index
    %c0_4 = arith.constant 0 : index
    %3 = vector.load %arg4[%c0_3, %c0_4] : memref<1x128xf32, #tpu.memory_space<vmem>>, vector<1x128xf32>
    %4 = vector.broadcast %3 : vector<1x128xf32> to vector<64x128xf32>
    %5 = arith.addf %2, %4 : vector<64x128xf32>
    %c0_5 = arith.constant 0 : index
    %c0_6 = arith.constant 0 : index
    %c0_7 = arith.constant 0 : index
    %6 = vector.load %arg2[%c0_5, %c0_6, %c0_7] : memref<8x128x128xf32, #tpu.memory_space<vmem>>, vector<1x128x128xf32>
    %7 = vector.shape_cast %6 : vector<1x128x128xf32> to vector<128x128xf32>
    %cst_8 = arith.constant dense<0.000000e+00> : vector<64x128xf32>
    %8 = tpu.matmul %0, %7, %cst_8 {dimension_numbers = #tpu.dot_dimension_numbers<[1], [0], [0], [1], [0, 0, 1, 1], [], []>} : vector<64x128xf32>, vector<128x128xf32>, vector<64x128xf32> -> vector<64x128xf32>
    %c0_9 = arith.constant 0 : index
    %c0_10 = arith.constant 0 : index
    %c0_11 = arith.constant 0 : index
    %9 = vector.load %arg0[%c0_9, %c0_10, %c0_11] : memref<8x64x64xf32, #tpu.memory_space<vmem>>, vector<1x64x64xf32>
    %10 = vector.shape_cast %9 : vector<1x64x64xf32> to vector<64x64xf32>
    %cst_12 = arith.constant dense<0.000000e+00> : vector<64x128xf32>
    %11 = tpu.matmul %10, %8, %cst_12 {dimension_numbers = #tpu.dot_dimension_numbers<[1], [0], [0], [1], [0, 0, 1, 1], [], []>} : vector<64x64xf32>, vector<64x128xf32>, vector<64x128xf32> -> vector<64x128xf32>
    %12 = arith.addf %5, %11 : vector<64x128xf32>
    %c1 = arith.constant 1 : index
    %c0_13 = arith.constant 0 : index
    %c0_14 = arith.constant 0 : index
    %13 = vector.load %arg2[%c1, %c0_13, %c0_14] : memref<8x128x128xf32, #tpu.memory_space<vmem>>, vector<1x128x128xf32>
    %14 = vector.shape_cast %13 : vector<1x128x128xf32> to vector<128x128xf32>
    %cst_15 = arith.constant dense<0.000000e+00> : vector<64x128xf32>
    %15 = tpu.matmul %0, %14, %cst_15 {dimension_numbers = #tpu.dot_dimension_numbers<[1], [0], [0], [1], [0, 0, 1, 1], [], []>} : vector<64x128xf32>, vector<128x128xf32>, vector<64x128xf32> -> vector<64x128xf32>
    %c1_16 = arith.constant 1 : index
    %c0_17 = arith.constant 0 : index
    %c0_18 = arith.constant 0 : index
    %16 = vector.load %arg0[%c1_16, %c0_17, %c0_18] : memref<8x64x64xf32, #tpu.memory_space<vmem>>, vector<1x64x64xf32>
    %17 = vector.shape_cast %16 : vector<1x64x64xf32> to vector<64x64xf32>
    %cst_19 = arith.constant dense<0.000000e+00> : vector<64x128xf32>
    %18 = tpu.matmul %17, %15, %cst_19 {dimension_numbers = #tpu.dot_dimension_numbers<[1], [0], [0], [1], [0, 0, 1, 1], [], []>} : vector<64x64xf32>, vector<64x128xf32>, vector<64x128xf32> -> vector<64x128xf32>
    %19 = arith.addf %12, %18 : vector<64x128xf32>
    %c2 = arith.constant 2 : index
    %c0_20 = arith.constant 0 : index
    %c0_21 = arith.constant 0 : index
    %20 = vector.load %arg2[%c2, %c0_20, %c0_21] : memref<8x128x128xf32, #tpu.memory_space<vmem>>, vector<1x128x128xf32>
    %21 = vector.shape_cast %20 : vector<1x128x128xf32> to vector<128x128xf32>
    %cst_22 = arith.constant dense<0.000000e+00> : vector<64x128xf32>
    %22 = tpu.matmul %0, %21, %cst_22 {dimension_numbers = #tpu.dot_dimension_numbers<[1], [0], [0], [1], [0, 0, 1, 1], [], []>} : vector<64x128xf32>, vector<128x128xf32>, vector<64x128xf32> -> vector<64x128xf32>
    %c2_23 = arith.constant 2 : index
    %c0_24 = arith.constant 0 : index
    %c0_25 = arith.constant 0 : index
    %23 = vector.load %arg0[%c2_23, %c0_24, %c0_25] : memref<8x64x64xf32, #tpu.memory_space<vmem>>, vector<1x64x64xf32>
    %24 = vector.shape_cast %23 : vector<1x64x64xf32> to vector<64x64xf32>
    %cst_26 = arith.constant dense<0.000000e+00> : vector<64x128xf32>
    %25 = tpu.matmul %24, %22, %cst_26 {dimension_numbers = #tpu.dot_dimension_numbers<[1], [0], [0], [1], [0, 0, 1, 1], [], []>} : vector<64x64xf32>, vector<64x128xf32>, vector<64x128xf32> -> vector<64x128xf32>
    %26 = arith.addf %19, %25 : vector<64x128xf32>
    %c3 = arith.constant 3 : index
    %c0_27 = arith.constant 0 : index
    %c0_28 = arith.constant 0 : index
    %27 = vector.load %arg2[%c3, %c0_27, %c0_28] : memref<8x128x128xf32, #tpu.memory_space<vmem>>, vector<1x128x128xf32>
    %28 = vector.shape_cast %27 : vector<1x128x128xf32> to vector<128x128xf32>
    %cst_29 = arith.constant dense<0.000000e+00> : vector<64x128xf32>
    %29 = tpu.matmul %0, %28, %cst_29 {dimension_numbers = #tpu.dot_dimension_numbers<[1], [0], [0], [1], [0, 0, 1, 1], [], []>} : vector<64x128xf32>, vector<128x128xf32>, vector<64x128xf32> -> vector<64x128xf32>
    %c3_30 = arith.constant 3 : index
    %c0_31 = arith.constant 0 : index
    %c0_32 = arith.constant 0 : index
    %30 = vector.load %arg0[%c3_30, %c0_31, %c0_32] : memref<8x64x64xf32, #tpu.memory_space<vmem>>, vector<1x64x64xf32>
    %31 = vector.shape_cast %30 : vector<1x64x64xf32> to vector<64x64xf32>
    %cst_33 = arith.constant dense<0.000000e+00> : vector<64x128xf32>
    %32 = tpu.matmul %31, %29, %cst_33 {dimension_numbers = #tpu.dot_dimension_numbers<[1], [0], [0], [1], [0, 0, 1, 1], [], []>} : vector<64x64xf32>, vector<64x128xf32>, vector<64x128xf32> -> vector<64x128xf32>
    %33 = arith.addf %26, %32 : vector<64x128xf32>
    %c4 = arith.constant 4 : index
    %c0_34 = arith.constant 0 : index
    %c0_35 = arith.constant 0 : index
    %34 = vector.load %arg2[%c4, %c0_34, %c0_35] : memref<8x128x128xf32, #tpu.memory_space<vmem>>, vector<1x128x128xf32>
    %35 = vector.shape_cast %34 : vector<1x128x128xf32> to vector<128x128xf32>
    %cst_36 = arith.constant dense<0.000000e+00> : vector<64x128xf32>
    %36 = tpu.matmul %0, %35, %cst_36 {dimension_numbers = #tpu.dot_dimension_numbers<[1], [0], [0], [1], [0, 0, 1, 1], [], []>} : vector<64x128xf32>, vector<128x128xf32>, vector<64x128xf32> -> vector<64x128xf32>
    %c4_37 = arith.constant 4 : index
    %c0_38 = arith.constant 0 : index
    %c0_39 = arith.constant 0 : index
    %37 = vector.load %arg0[%c4_37, %c0_38, %c0_39] : memref<8x64x64xf32, #tpu.memory_space<vmem>>, vector<1x64x64xf32>
    %38 = vector.shape_cast %37 : vector<1x64x64xf32> to vector<64x64xf32>
    %cst_40 = arith.constant dense<0.000000e+00> : vector<64x128xf32>
    %39 = tpu.matmul %38, %36, %cst_40 {dimension_numbers = #tpu.dot_dimension_numbers<[1], [0], [0], [1], [0, 0, 1, 1], [], []>} : vector<64x64xf32>, vector<64x128xf32>, vector<64x128xf32> -> vector<64x128xf32>
    %40 = arith.addf %33, %39 : vector<64x128xf32>
    %c5 = arith.constant 5 : index
    %c0_41 = arith.constant 0 : index
    %c0_42 = arith.constant 0 : index
    %41 = vector.load %arg2[%c5, %c0_41, %c0_42] : memref<8x128x128xf32, #tpu.memory_space<vmem>>, vector<1x128x128xf32>
    %42 = vector.shape_cast %41 : vector<1x128x128xf32> to vector<128x128xf32>
    %cst_43 = arith.constant dense<0.000000e+00> : vector<64x128xf32>
    %43 = tpu.matmul %0, %42, %cst_43 {dimension_numbers = #tpu.dot_dimension_numbers<[1], [0], [0], [1], [0, 0, 1, 1], [], []>} : vector<64x128xf32>, vector<128x128xf32>, vector<64x128xf32> -> vector<64x128xf32>
    %c5_44 = arith.constant 5 : index
    %c0_45 = arith.constant 0 : index
    %c0_46 = arith.constant 0 : index
    %44 = vector.load %arg0[%c5_44, %c0_45, %c0_46] : memref<8x64x64xf32, #tpu.memory_space<vmem>>, vector<1x64x64xf32>
    %45 = vector.shape_cast %44 : vector<1x64x64xf32> to vector<64x64xf32>
    %cst_47 = arith.constant dense<0.000000e+00> : vector<64x128xf32>
    %46 = tpu.matmul %45, %43, %cst_47 {dimension_numbers = #tpu.dot_dimension_numbers<[1], [0], [0], [1], [0, 0, 1, 1], [], []>} : vector<64x64xf32>, vector<64x128xf32>, vector<64x128xf32> -> vector<64x128xf32>
    %47 = arith.addf %40, %46 : vector<64x128xf32>
    %c6 = arith.constant 6 : index
    %c0_48 = arith.constant 0 : index
    %c0_49 = arith.constant 0 : index
    %48 = vector.load %arg2[%c6, %c0_48, %c0_49] : memref<8x128x128xf32, #tpu.memory_space<vmem>>, vector<1x128x128xf32>
    %49 = vector.shape_cast %48 : vector<1x128x128xf32> to vector<128x128xf32>
    %cst_50 = arith.constant dense<0.000000e+00> : vector<64x128xf32>
    %50 = tpu.matmul %0, %49, %cst_50 {dimension_numbers = #tpu.dot_dimension_numbers<[1], [0], [0], [1], [0, 0, 1, 1], [], []>} : vector<64x128xf32>, vector<128x128xf32>, vector<64x128xf32> -> vector<64x128xf32>
    %c6_51 = arith.constant 6 : index
    %c0_52 = arith.constant 0 : index
    %c0_53 = arith.constant 0 : index
    %51 = vector.load %arg0[%c6_51, %c0_52, %c0_53] : memref<8x64x64xf32, #tpu.memory_space<vmem>>, vector<1x64x64xf32>
    %52 = vector.shape_cast %51 : vector<1x64x64xf32> to vector<64x64xf32>
    %cst_54 = arith.constant dense<0.000000e+00> : vector<64x128xf32>
    %53 = tpu.matmul %52, %50, %cst_54 {dimension_numbers = #tpu.dot_dimension_numbers<[1], [0], [0], [1], [0, 0, 1, 1], [], []>} : vector<64x64xf32>, vector<64x128xf32>, vector<64x128xf32> -> vector<64x128xf32>
    %54 = arith.addf %47, %53 : vector<64x128xf32>
    %c7 = arith.constant 7 : index
    %c0_55 = arith.constant 0 : index
    %c0_56 = arith.constant 0 : index
    %55 = vector.load %arg2[%c7, %c0_55, %c0_56] : memref<8x128x128xf32, #tpu.memory_space<vmem>>, vector<1x128x128xf32>
    %56 = vector.shape_cast %55 : vector<1x128x128xf32> to vector<128x128xf32>
    %cst_57 = arith.constant dense<0.000000e+00> : vector<64x128xf32>
    %57 = tpu.matmul %0, %56, %cst_57 {dimension_numbers = #tpu.dot_dimension_numbers<[1], [0], [0], [1], [0, 0, 1, 1], [], []>} : vector<64x128xf32>, vector<128x128xf32>, vector<64x128xf32> -> vector<64x128xf32>
    %c7_58 = arith.constant 7 : index
    %c0_59 = arith.constant 0 : index
    %c0_60 = arith.constant 0 : index
    %58 = vector.load %arg0[%c7_58, %c0_59, %c0_60] : memref<8x64x64xf32, #tpu.memory_space<vmem>>, vector<1x64x64xf32>
    %59 = vector.shape_cast %58 : vector<1x64x64xf32> to vector<64x64xf32>
    %cst_61 = arith.constant dense<0.000000e+00> : vector<64x128xf32>
    %60 = tpu.matmul %59, %57, %cst_61 {dimension_numbers = #tpu.dot_dimension_numbers<[1], [0], [0], [1], [0, 0, 1, 1], [], []>} : vector<64x64xf32>, vector<64x128xf32>, vector<64x128xf32> -> vector<64x128xf32>
    %61 = arith.addf %54, %60 : vector<64x128xf32>
    %cst_62 = arith.constant 0.000000e+00 : f32
    %62 = vector.broadcast %cst_62 : f32 to vector<64x128xf32>
    %63 = arith.maximumf %61, %62 : vector<64x128xf32>
    %c0_63 = arith.constant 0 : index
    %c0_64 = arith.constant 0 : index
    %64 = vector.load %arg6[%c0_63, %c0_64] : memref<128x128xf32, #tpu.memory_space<vmem>>, vector<128x128xf32>
    %cst_65 = arith.constant dense<0.000000e+00> : vector<64x128xf32>
    %65 = tpu.matmul %63, %64, %cst_65 {dimension_numbers = #tpu.dot_dimension_numbers<[1], [0], [0], [1], [0, 0, 1, 1], [], []>} : vector<64x128xf32>, vector<128x128xf32>, vector<64x128xf32> -> vector<64x128xf32>
    %c0_66 = arith.constant 0 : index
    %c0_67 = arith.constant 0 : index
    %66 = vector.load %arg7[%c0_66, %c0_67] : memref<1x128xf32, #tpu.memory_space<vmem>>, vector<1x128xf32>
    %67 = vector.broadcast %66 : vector<1x128xf32> to vector<64x128xf32>
    %68 = arith.addf %65, %67 : vector<64x128xf32>
    %c0_68 = arith.constant 0 : index
    %c0_69 = arith.constant 0 : index
    %c0_70 = arith.constant 0 : index
    %69 = vector.load %arg5[%c0_68, %c0_69, %c0_70] : memref<8x128x128xf32, #tpu.memory_space<vmem>>, vector<1x128x128xf32>
    %70 = vector.shape_cast %69 : vector<1x128x128xf32> to vector<128x128xf32>
    %cst_71 = arith.constant dense<0.000000e+00> : vector<64x128xf32>
    %71 = tpu.matmul %63, %70, %cst_71 {dimension_numbers = #tpu.dot_dimension_numbers<[1], [0], [0], [1], [0, 0, 1, 1], [], []>} : vector<64x128xf32>, vector<128x128xf32>, vector<64x128xf32> -> vector<64x128xf32>
    %c0_72 = arith.constant 0 : index
    %c0_73 = arith.constant 0 : index
    %c0_74 = arith.constant 0 : index
    %72 = vector.load %arg0[%c0_72, %c0_73, %c0_74] : memref<8x64x64xf32, #tpu.memory_space<vmem>>, vector<1x64x64xf32>
    %73 = vector.shape_cast %72 : vector<1x64x64xf32> to vector<64x64xf32>
    %cst_75 = arith.constant dense<0.000000e+00> : vector<64x128xf32>
    %74 = tpu.matmul %73, %71, %cst_75 {dimension_numbers = #tpu.dot_dimension_numbers<[1], [0], [0], [1], [0, 0, 1, 1], [], []>} : vector<64x64xf32>, vector<64x128xf32>, vector<64x128xf32> -> vector<64x128xf32>
    %75 = arith.addf %68, %74 : vector<64x128xf32>
    %c1_76 = arith.constant 1 : index
    %c0_77 = arith.constant 0 : index
    %c0_78 = arith.constant 0 : index
    %76 = vector.load %arg5[%c1_76, %c0_77, %c0_78] : memref<8x128x128xf32, #tpu.memory_space<vmem>>, vector<1x128x128xf32>
    %77 = vector.shape_cast %76 : vector<1x128x128xf32> to vector<128x128xf32>
    %cst_79 = arith.constant dense<0.000000e+00> : vector<64x128xf32>
    %78 = tpu.matmul %63, %77, %cst_79 {dimension_numbers = #tpu.dot_dimension_numbers<[1], [0], [0], [1], [0, 0, 1, 1], [], []>} : vector<64x128xf32>, vector<128x128xf32>, vector<64x128xf32> -> vector<64x128xf32>
    %c1_80 = arith.constant 1 : index
    %c0_81 = arith.constant 0 : index
    %c0_82 = arith.constant 0 : index
    %79 = vector.load %arg0[%c1_80, %c0_81, %c0_82] : memref<8x64x64xf32, #tpu.memory_space<vmem>>, vector<1x64x64xf32>
    %80 = vector.shape_cast %79 : vector<1x64x64xf32> to vector<64x64xf32>
    %cst_83 = arith.constant dense<0.000000e+00> : vector<64x128xf32>
    %81 = tpu.matmul %80, %78, %cst_83 {dimension_numbers = #tpu.dot_dimension_numbers<[1], [0], [0], [1], [0, 0, 1, 1], [], []>} : vector<64x64xf32>, vector<64x128xf32>, vector<64x128xf32> -> vector<64x128xf32>
    %82 = arith.addf %75, %81 : vector<64x128xf32>
    %c2_84 = arith.constant 2 : index
    %c0_85 = arith.constant 0 : index
    %c0_86 = arith.constant 0 : index
    %83 = vector.load %arg5[%c2_84, %c0_85, %c0_86] : memref<8x128x128xf32, #tpu.memory_space<vmem>>, vector<1x128x128xf32>
    %84 = vector.shape_cast %83 : vector<1x128x128xf32> to vector<128x128xf32>
    %cst_87 = arith.constant dense<0.000000e+00> : vector<64x128xf32>
    %85 = tpu.matmul %63, %84, %cst_87 {dimension_numbers = #tpu.dot_dimension_numbers<[1], [0], [0], [1], [0, 0, 1, 1], [], []>} : vector<64x128xf32>, vector<128x128xf32>, vector<64x128xf32> -> vector<64x128xf32>
    %c2_88 = arith.constant 2 : index
    %c0_89 = arith.constant 0 : index
    %c0_90 = arith.constant 0 : index
    %86 = vector.load %arg0[%c2_88, %c0_89, %c0_90] : memref<8x64x64xf32, #tpu.memory_space<vmem>>, vector<1x64x64xf32>
    %87 = vector.shape_cast %86 : vector<1x64x64xf32> to vector<64x64xf32>
    %cst_91 = arith.constant dense<0.000000e+00> : vector<64x128xf32>
    %88 = tpu.matmul %87, %85, %cst_91 {dimension_numbers = #tpu.dot_dimension_numbers<[1], [0], [0], [1], [0, 0, 1, 1], [], []>} : vector<64x64xf32>, vector<64x128xf32>, vector<64x128xf32> -> vector<64x128xf32>
    %89 = arith.addf %82, %88 : vector<64x128xf32>
    %c3_92 = arith.constant 3 : index
    %c0_93 = arith.constant 0 : index
    %c0_94 = arith.constant 0 : index
    %90 = vector.load %arg5[%c3_92, %c0_93, %c0_94] : memref<8x128x128xf32, #tpu.memory_space<vmem>>, vector<1x128x128xf32>
    %91 = vector.shape_cast %90 : vector<1x128x128xf32> to vector<128x128xf32>
    %cst_95 = arith.constant dense<0.000000e+00> : vector<64x128xf32>
    %92 = tpu.matmul %63, %91, %cst_95 {dimension_numbers = #tpu.dot_dimension_numbers<[1], [0], [0], [1], [0, 0, 1, 1], [], []>} : vector<64x128xf32>, vector<128x128xf32>, vector<64x128xf32> -> vector<64x128xf32>
    %c3_96 = arith.constant 3 : index
    %c0_97 = arith.constant 0 : index
    %c0_98 = arith.constant 0 : index
    %93 = vector.load %arg0[%c3_96, %c0_97, %c0_98] : memref<8x64x64xf32, #tpu.memory_space<vmem>>, vector<1x64x64xf32>
    %94 = vector.shape_cast %93 : vector<1x64x64xf32> to vector<64x64xf32>
    %cst_99 = arith.constant dense<0.000000e+00> : vector<64x128xf32>
    %95 = tpu.matmul %94, %92, %cst_99 {dimension_numbers = #tpu.dot_dimension_numbers<[1], [0], [0], [1], [0, 0, 1, 1], [], []>} : vector<64x64xf32>, vector<64x128xf32>, vector<64x128xf32> -> vector<64x128xf32>
    %96 = arith.addf %89, %95 : vector<64x128xf32>
    %c4_100 = arith.constant 4 : index
    %c0_101 = arith.constant 0 : index
    %c0_102 = arith.constant 0 : index
    %97 = vector.load %arg5[%c4_100, %c0_101, %c0_102] : memref<8x128x128xf32, #tpu.memory_space<vmem>>, vector<1x128x128xf32>
    %98 = vector.shape_cast %97 : vector<1x128x128xf32> to vector<128x128xf32>
    %cst_103 = arith.constant dense<0.000000e+00> : vector<64x128xf32>
    %99 = tpu.matmul %63, %98, %cst_103 {dimension_numbers = #tpu.dot_dimension_numbers<[1], [0], [0], [1], [0, 0, 1, 1], [], []>} : vector<64x128xf32>, vector<128x128xf32>, vector<64x128xf32> -> vector<64x128xf32>
    %c4_104 = arith.constant 4 : index
    %c0_105 = arith.constant 0 : index
    %c0_106 = arith.constant 0 : index
    %100 = vector.load %arg0[%c4_104, %c0_105, %c0_106] : memref<8x64x64xf32, #tpu.memory_space<vmem>>, vector<1x64x64xf32>
    %101 = vector.shape_cast %100 : vector<1x64x64xf32> to vector<64x64xf32>
    %cst_107 = arith.constant dense<0.000000e+00> : vector<64x128xf32>
    %102 = tpu.matmul %101, %99, %cst_107 {dimension_numbers = #tpu.dot_dimension_numbers<[1], [0], [0], [1], [0, 0, 1, 1], [], []>} : vector<64x64xf32>, vector<64x128xf32>, vector<64x128xf32> -> vector<64x128xf32>
    %103 = arith.addf %96, %102 : vector<64x128xf32>
    %c5_108 = arith.constant 5 : index
    %c0_109 = arith.constant 0 : index
    %c0_110 = arith.constant 0 : index
    %104 = vector.load %arg5[%c5_108, %c0_109, %c0_110] : memref<8x128x128xf32, #tpu.memory_space<vmem>>, vector<1x128x128xf32>
    %105 = vector.shape_cast %104 : vector<1x128x128xf32> to vector<128x128xf32>
    %cst_111 = arith.constant dense<0.000000e+00> : vector<64x128xf32>
    %106 = tpu.matmul %63, %105, %cst_111 {dimension_numbers = #tpu.dot_dimension_numbers<[1], [0], [0], [1], [0, 0, 1, 1], [], []>} : vector<64x128xf32>, vector<128x128xf32>, vector<64x128xf32> -> vector<64x128xf32>
    %c5_112 = arith.constant 5 : index
    %c0_113 = arith.constant 0 : index
    %c0_114 = arith.constant 0 : index
    %107 = vector.load %arg0[%c5_112, %c0_113, %c0_114] : memref<8x64x64xf32, #tpu.memory_space<vmem>>, vector<1x64x64xf32>
    %108 = vector.shape_cast %107 : vector<1x64x64xf32> to vector<64x64xf32>
    %cst_115 = arith.constant dense<0.000000e+00> : vector<64x128xf32>
    %109 = tpu.matmul %108, %106, %cst_115 {dimension_numbers = #tpu.dot_dimension_numbers<[1], [0], [0], [1], [0, 0, 1, 1], [], []>} : vector<64x64xf32>, vector<64x128xf32>, vector<64x128xf32> -> vector<64x128xf32>
    %110 = arith.addf %103, %109 : vector<64x128xf32>
    %c6_116 = arith.constant 6 : index
    %c0_117 = arith.constant 0 : index
    %c0_118 = arith.constant 0 : index
    %111 = vector.load %arg5[%c6_116, %c0_117, %c0_118] : memref<8x128x128xf32, #tpu.memory_space<vmem>>, vector<1x128x128xf32>
    %112 = vector.shape_cast %111 : vector<1x128x128xf32> to vector<128x128xf32>
    %cst_119 = arith.constant dense<0.000000e+00> : vector<64x128xf32>
    %113 = tpu.matmul %63, %112, %cst_119 {dimension_numbers = #tpu.dot_dimension_numbers<[1], [0], [0], [1], [0, 0, 1, 1], [], []>} : vector<64x128xf32>, vector<128x128xf32>, vector<64x128xf32> -> vector<64x128xf32>
    %c6_120 = arith.constant 6 : index
    %c0_121 = arith.constant 0 : index
    %c0_122 = arith.constant 0 : index
    %114 = vector.load %arg0[%c6_120, %c0_121, %c0_122] : memref<8x64x64xf32, #tpu.memory_space<vmem>>, vector<1x64x64xf32>
    %115 = vector.shape_cast %114 : vector<1x64x64xf32> to vector<64x64xf32>
    %cst_123 = arith.constant dense<0.000000e+00> : vector<64x128xf32>
    %116 = tpu.matmul %115, %113, %cst_123 {dimension_numbers = #tpu.dot_dimension_numbers<[1], [0], [0], [1], [0, 0, 1, 1], [], []>} : vector<64x64xf32>, vector<64x128xf32>, vector<64x128xf32> -> vector<64x128xf32>
    %117 = arith.addf %110, %116 : vector<64x128xf32>
    %c7_124 = arith.constant 7 : index
    %c0_125 = arith.constant 0 : index
    %c0_126 = arith.constant 0 : index
    %118 = vector.load %arg5[%c7_124, %c0_125, %c0_126] : memref<8x128x128xf32, #tpu.memory_space<vmem>>, vector<1x128x128xf32>
    %119 = vector.shape_cast %118 : vector<1x128x128xf32> to vector<128x128xf32>
    %cst_127 = arith.constant dense<0.000000e+00> : vector<64x128xf32>
    %120 = tpu.matmul %63, %119, %cst_127 {dimension_numbers = #tpu.dot_dimension_numbers<[1], [0], [0], [1], [0, 0, 1, 1], [], []>} : vector<64x128xf32>, vector<128x128xf32>, vector<64x128xf32> -> vector<64x128xf32>
    %c7_128 = arith.constant 7 : index
    %c0_129 = arith.constant 0 : index
    %c0_130 = arith.constant 0 : index
    %121 = vector.load %arg0[%c7_128, %c0_129, %c0_130] : memref<8x64x64xf32, #tpu.memory_space<vmem>>, vector<1x64x64xf32>
    %122 = vector.shape_cast %121 : vector<1x64x64xf32> to vector<64x64xf32>
    %cst_131 = arith.constant dense<0.000000e+00> : vector<64x128xf32>
    %123 = tpu.matmul %122, %120, %cst_131 {dimension_numbers = #tpu.dot_dimension_numbers<[1], [0], [0], [1], [0, 0, 1, 1], [], []>} : vector<64x64xf32>, vector<64x128xf32>, vector<64x128xf32> -> vector<64x128xf32>
    %124 = arith.addf %117, %123 : vector<64x128xf32>
    %c0_132 = arith.constant 0 : index
    %c0_133 = arith.constant 0 : index
    %125 = vector.load %arg8[%c0_132, %c0_133] : memref<64x128xf32, #tpu.memory_space<vmem>>, vector<64x128xf32>
    tpu.vector_store %arg8[%c0_132, %c0_133], %124 {strides = array<i32>} : memref<64x128xf32, #tpu.memory_space<vmem>>, vector<64x128xf32>,
    return
  }
}

</mosaic_0001>

<bundles_post_ra>
// kernel: link_predict_forward.1
= control target key start
LH: loop header
LB: loop body
LE: loop exit
PB: predicated region body
PF: predicated region fallthrough
CT: control target
= control target key end

     0   :  { %vm163_vm0 = vcmask 523264   ;;  %s4688_s3 = inlined_call_operand.vmem [shape: f32[128,128], index: 3, kind: input, shape index: {}]   ;;  %s4689_s4 = inlined_call_operand.vmem [shape: f32[1,128], index: 4, kind: input, shape index: {}]   ;;  %s4690_s1 = inlined_call_operand.vmem [shape: f32[64,128], index: 1, kind: input, shape index: {}]   ;;  %s4691_s2 = inlined_call_operand.vmem [shape: f32[8,128,128], index: 2, kind: input, shape index: {}]   ;;  %s4692_s0 = inlined_call_operand.vmem [shape: f32[8,64,64], index: 0, kind: input, shape index: {}]   ;;  %s4693_s6 = inlined_call_operand.vmem [shape: f32[128,128], index: 6, kind: input, shape index: {}]   ;;  %s4694_s5 = inlined_call_operand.vmem [shape: f32[8,128,128], index: 5, kind: input, shape index: {}]   ;;  %s4695_s7 = inlined_call_operand.vmem [shape: f32[1,128], index: 7, kind: input, shape index: {}]   ;;  %s4696_s8 = inlined_call_operand.vmem [shape: f32[64,128], index: 8, kind: output, shape index: {}]  }
   0x1   :  { %v52_v0 = vld [vmem:[%s4688_s3 + $0x78] sm:$0xff]  ;;  %v51_v1 = vld [vmem:[%s4688_s3 + $0x70] sm:$0xff]  ;;  %v50_v2 = vld [vmem:[%s4688_s3 + $0x68] sm:$0xff] }
   0x2   :  { %2561 = vmatpush.msra.mxu1 %v52_v0  ;;  %57 = vmatpush.msra.mxu0 %v52_v0  ;;  %v49_v3 = vld [vmem:[%s4688_s3 + $0x60] sm:$0xff]  ;;  %v48_v4 = vld [vmem:[%s4688_s3 + $0x58] sm:$0xff]  ;;  %v47_v5 = vld [vmem:[%s4688_s3 + $0x50] sm:$0xff] }
   0x3   :  { %v46_v6 = vld [vmem:[%s4688_s3 + $0x48] sm:$0xff]  ;;  %v45_v7 = vld [vmem:[%s4688_s3 + $0x40] sm:$0xff]  ;;  %v44_v8 = vld [vmem:[%s4688_s3 + $0x38] sm:$0xff] }
   0x4   :  { %2562 = vmatpush.msra.mxu1 %v51_v1  ;;  %58 = vmatpush.msra.mxu0 %v51_v1  ;;  %v43_v9 = vld [vmem:[%s4688_s3 + $0x30] sm:$0xff]  ;;  %v42_v10 = vld [vmem:[%s4688_s3 + $0x28] sm:$0xff]  ;;  %v41_v11 = vld [vmem:[%s4688_s3 + $0x20] sm:$0xff] }
   0x5   :  { %v40_v12 = vld [vmem:[%s4688_s3 + $0x18] sm:$0xff]  ;;  %v39_v13 = vld [vmem:[%s4688_s3 + $0x10] sm:$0xff]  ;;  %v38_v14 = vld [vmem:[%s4688_s3 + $0x8] sm:$0xff] }
   0x6   :  { %2563 = vmatpush.msra.mxu1 %v50_v2  ;;  %59 = vmatpush.msra.mxu0 %v50_v2  ;;  %v37_v15 = vld [vmem:[%s4688_s3] sm:$0xff]  ;;  %v113_v17 = vld [vmem:[%s4691_s2 + $0x78] sm:$0xff]  ;;  %v112_v19 = vld [vmem:[%s4691_s2 + $0x70] sm:$0xff] }
   0x7   :  { %v2755_v16 = vld [vmem:[%s4690_s1 + $0x20] sm:$0xff]  ;;  %v111_v20 = vld [vmem:[%s4691_s2 + $0x68] sm:$0xff]  ;;  %v109_v23 = vld [vmem:[%s4691_s2 + $0x58] sm:$0xff] }
   0x8   :  { %2564 = vmatpush.msra.mxu1 %v49_v3  ;;  %60 = vmatpush.msra.mxu0 %v49_v3  ;;  %v2763_v18 = vld [vmem:[%s4690_s1] sm:$0xff]  ;;  %v2779_v22 = vld [vmem:[%s4690_s1 + $0x28] sm:$0xff]  ;;  %v108_v25 = vld [vmem:[%s4691_s2 + $0x50] sm:$0xff] }
   0x9   :  { %v110_v21 = vld [vmem:[%s4691_s2 + $0x60] sm:$0xff]  ;;  %v2787_v24 = vld [vmem:[%s4690_s1 + $0x8] sm:$0xff]  ;;  %v2803_v28 = vld [vmem:[%s4690_s1 + $0x30] sm:$0xff] }
   0xa   :  { %2565 = vmatpush.msra.mxu1 %v48_v4  ;;  %61 = vmatpush.msra.mxu0 %v48_v4  ;;  %v107_v26 = vld [vmem:[%s4691_s2 + $0x48] sm:$0xff]  ;;  %v106_v27 = vld [vmem:[%s4691_s2 + $0x40] sm:$0xff]  ;;  %v105_v29 = vld [vmem:[%s4691_s2 + $0x38] sm:$0xff] }
   0xb   :  { %v2811_v30 = vld [vmem:[%s4690_s1 + $0x10] sm:$0xff]  ;;  %v103_v32 = vld [vmem:[%s4691_s2 + $0x28] sm:$0xff]  ;;  %v102_v33 = vld [vmem:[%s4691_s2 + $0x20] sm:$0xff] }
   0xc   :  { %2566 = vmatpush.msra.mxu1 %v47_v5  ;;  %62 = vmatpush.msra.mxu0 %v47_v5  ;;  %v104_v31 = vld [vmem:[%s4691_s2 + $0x30] sm:$0xff]  ;;  %v2827_v34 = vld [vmem:[%s4690_s1 + $0x38] sm:$0xff]  ;;  %v99_v38 = vld [vmem:[%s4691_s2 + $0x8] sm:$0xff] }
   0xd   :  { %v101_v35 = vld [vmem:[%s4691_s2 + $0x18] sm:$0xff]  ;;  %v100_v37 = vld [vmem:[%s4691_s2 + $0x10] sm:$0xff]  ;;  %v98_v39 = vld [vmem:[%s4691_s2] sm:$0xff] }
   0xe   :  { %2567 = vmatpush.msra.mxu1 %v46_v6  ;;  %63 = vmatpush.msra.mxu0 %v46_v6  ;;  %v2835_v36 = vld [vmem:[%s4690_s1 + $0x18] sm:$0xff]  ;;  %v2207_v53 = vld [vmem:[%s4691_s2 + $0x170] sm:$0xff]  ;;  %v2206_v54 = vld [vmem:[%s4691_s2 + $0x168] sm:$0xff] }
   0xf   :  { %v2208_v52 = vld [vmem:[%s4691_s2 + $0x178] sm:$0xff]  ;;  %v2205_v55 = vld [vmem:[%s4691_s2 + $0x160] sm:$0xff]  ;;  %v157_v57 = vld [vmem:[%s4692_s0 + $0x10] sm:$0xff] }
  0x10   :  { %2568 = vmatpush.msra.mxu1 %v45_v7  ;;  %64 = vmatpush.msra.mxu0 %v45_v7  ;;  %v2204_v56 = vld [vmem:[%s4691_s2 + $0x158] sm:$0xff]  ;;  %v2203_v58 = vld [vmem:[%s4691_s2 + $0x150] sm:$0xff]  ;;  %v2202_v61 = vld [vmem:[%s4691_s2 + $0x148] sm:$0xff] }
  0x11   :  { %v2176_v59 = vld [vmem:[%s4691_s2 + $0xf8] sm:$0xff]  ;;  %v2175_v60 = vld [vmem:[%s4691_s2 + $0xf0] sm:$0xff]  ;;  %v2201_v62 = vld [vmem:[%s4691_s2 + $0x140] sm:$0xff] }
  0x12   :  { %2569 = vmatpush.msra.mxu1 %v44_v8  ;;  %65 = vmatpush.msra.mxu0 %v44_v8  ;;  %v2174_v63 = vld [vmem:[%s4691_s2 + $0xe8] sm:$0xff]  ;;  %v2200_v0 = vld [vmem:[%s4691_s2 + $0x138] sm:$0xff]  ;;  %v2173_v1 = vld [vmem:[%s4691_s2 + $0xe0] sm:$0xff] }
  0x13   :  { %v158_v2 = vld [vmem:[%s4692_s0 + $0x18] sm:$0xff]  ;;  %v2199_v3 = vld [vmem:[%s4691_s2 + $0x130] sm:$0xff]  ;;  %v2198_v6 = vld [vmem:[%s4691_s2 + $0x128] sm:$0xff] }
  0x14   :  { %2570 = vmatpush.msra.mxu1 %v43_v9  ;;  %66 = vmatpush.msra.mxu0 %v43_v9  ;;  %v2172_v4 = vld [vmem:[%s4691_s2 + $0xd8] sm:$0xff]  ;;  %v2171_v5 = vld [vmem:[%s4691_s2 + $0xd0] sm:$0xff]  ;;  %v2197_v7 = vld [vmem:[%s4691_s2 + $0x120] sm:$0xff] }
  0x15   :  { %v2170_v8 = vld [vmem:[%s4691_s2 + $0xc8] sm:$0xff]  ;;  %v2196_v9 = vld [vmem:[%s4691_s2 + $0x118] sm:$0xff] }
  0x16   :  { %2571 = vmatpush.msra.mxu1 %v42_v10  ;;  %67 = vmatpush.msra.mxu0 %v42_v10  ;;  %v2169_v10 = vld [vmem:[%s4691_s2 + $0xc0] sm:$0xff] }
  0x18   :  { %2572 = vmatpush.msra.mxu1 %v41_v11  ;;  %68 = vmatpush.msra.mxu0 %v41_v11  ;;  %v159_v11 = vld [vmem:[%s4692_s0 + $0x20] sm:$0xff] }
  0x1a   :  { %2573 = vmatpush.msra.mxu1 %v40_v12  ;;  %69 = vmatpush.msra.mxu0 %v40_v12  ;;  %v2195_v12 = vld [vmem:[%s4691_s2 + $0x110] sm:$0xff] }
  0x1c   :  { %2574 = vmatpush.msra.mxu1 %v39_v13  ;;  %70 = vmatpush.msra.mxu0 %v39_v13  ;;  %v2168_v13 = vld [vmem:[%s4691_s2 + $0xb8] sm:$0xff] }
  0x1e   :  { %2575 = vmatpush.msra.mxu1 %v38_v14  ;;  %71 = vmatpush.msra.mxu0 %v38_v14  ;;  %v2167_v14 = vld [vmem:[%s4691_s2 + $0xb0] sm:$0xff] }
  0x20   :  { %2576 = vmatpush.msra.mxu1 %v37_v15  ;;  %72 = vmatpush.msra.mxu0 %v37_v15  ;;  %v2194_v15 = vld [vmem:[%s4691_s2 + $0x108] sm:$0xff] }
  0x21   :  { %85 = vmatmul.f32.vlgmr.msra.gmra.mxu1 %v2755_v16  ;;  %73 = vmatmul.f32.vlgmr.msra.gmra.mxu0 %v2763_v18 }
  0x22   :  { %114 = vmatpush.msrb.mxu1 %v113_v17  ;;  %394 = vmatpush.msrb.mxu0 %v2208_v52  ;;  %v2193_v17 = vld [vmem:[%s4691_s2 + $0x100] sm:$0xff] }
  0x23   :  { %v2233_v52 = vld [vmem:[%s4691_s2 + $0x1c0] sm:$0xff] }
  0x24   :  { %115 = vmatpush.msrb.mxu1 %v112_v19  ;;  %395 = vmatpush.msrb.mxu0 %v2207_v53  ;;  %v2166_v19 = vld [vmem:[%s4691_s2 + $0xa8] sm:$0xff]  ;;  %v2267_v53 = vld [vmem:[%s4691_s2 + $0x250] sm:$0xff] }
  0x26   :  { %116 = vmatpush.msrb.mxu1 %v111_v20  ;;  %396 = vmatpush.msrb.mxu0 %v2206_v54  ;;  %v2165_v20 = vld [vmem:[%s4691_s2 + $0xa0] sm:$0xff]  ;;  %v2232_v54 = vld [vmem:[%s4691_s2 + $0x1b8] sm:$0xff] }
  0x28   :  { %117 = vmatpush.msrb.mxu1 %v110_v21  ;;  %397 = vmatpush.msrb.mxu0 %v2205_v55  ;;  %v160_v21 = vld [vmem:[%s4692_s0 + $0x28] sm:$0xff] }
  0x29   :  { %88 = vmatmul.f32.gmra.mxu1 %v2779_v22  ;;  %76 = vmatmul.f32.gmra.mxu0 %v2787_v24  ;;  %v2266_v55 = vld [vmem:[%s4691_s2 + $0x248] sm:$0xff] }
  0x2a   :  { %118 = vmatpush.msrb.mxu1 %v109_v23  ;;  %398 = vmatpush.msrb.mxu0 %v2204_v56  ;;  %v2164_v23 = vld [vmem:[%s4691_s2 + $0x98] sm:$0xff]  ;;  %v2231_v56 = vld [vmem:[%s4691_s2 + $0x1b0] sm:$0xff] }
  0x2c   :  { %119 = vmatpush.msrb.mxu1 %v108_v25  ;;  %399 = vmatpush.msrb.mxu0 %v2203_v58  ;;  %v2163_v25 = vld [vmem:[%s4691_s2 + $0x90] sm:$0xff]  ;;  %v2230_v58 = vld [vmem:[%s4691_s2 + $0x1a8] sm:$0xff] }
  0x2e   :  { %120 = vmatpush.msrb.mxu1 %v107_v26  ;;  %400 = vmatpush.msrb.mxu0 %v2202_v61  ;;  %v2162_v26 = vld [vmem:[%s4691_s2 + $0x88] sm:$0xff]  ;;  %v2263_v61 = vld [vmem:[%s4691_s2 + $0x230] sm:$0xff] }
  0x30   :  { %121 = vmatpush.msrb.mxu1 %v106_v27  ;;  %401 = vmatpush.msrb.mxu0 %v2201_v62  ;;  %v2161_v27 = vld [vmem:[%s4691_s2 + $0x80] sm:$0xff]  ;;  %v2228_v62 = vld [vmem:[%s4691_s2 + $0x198] sm:$0xff] }
  0x31   :  { %91 = vmatmul.f32.gmra.mxu1 %v2803_v28  ;;  %79 = vmatmul.f32.gmra.mxu0 %v2811_v30 }
  0x32   :  { %122 = vmatpush.msrb.mxu1 %v105_v29  ;;  %402 = vmatpush.msrb.mxu0 %v2200_v0  ;;  %v161_v29 = vld [vmem:[%s4692_s0 + $0x30] sm:$0xff] }
  0x33   :  { %v2227_v0 = vld [vmem:[%s4691_s2 + $0x190] sm:$0xff] }
  0x34   :  { %123 = vmatpush.msrb.mxu1 %v104_v31  ;;  %403 = vmatpush.msrb.mxu0 %v2199_v3  ;;  %v162_v31 = vld [vmem:[%s4692_s0 + $0x38] sm:$0xff] }
  0x35   :  { %v2260_v3 = vld [vmem:[%s4691_s2 + $0x218] sm:$0xff] }
  0x36   :  { %124 = vmatpush.msrb.mxu1 %v103_v32  ;;  %404 = vmatpush.msrb.mxu0 %v2198_v6  ;;  %v2240_v32 = vld [vmem:[%s4691_s2 + $0x1f8] sm:$0xff]  ;;  %v2258_v6 = vld [vmem:[%s4691_s2 + $0x208] sm:$0xff] }
  0x38   :  { %125 = vmatpush.msrb.mxu1 %v102_v33  ;;  %405 = vmatpush.msrb.mxu0 %v2197_v7  ;;  %v2239_v33 = vld [vmem:[%s4691_s2 + $0x1f0] sm:$0xff]  ;;  %v2257_v7 = vld [vmem:[%s4691_s2 + $0x200] sm:$0xff] }
  0x39   :  { %94 = vmatmul.f32.gmra.mxu1 %v2827_v34  ;;  %82 = vmatmul.f32.gmra.mxu0 %v2835_v36 }
  0x3a   :  { %126 = vmatpush.msrb.mxu1 %v101_v35  ;;  %406 = vmatpush.msrb.mxu0 %v2196_v9  ;;  %v2272_v35 = vld [vmem:[%s4691_s2 + $0x278] sm:$0xff] }
  0x3b   :  { %v2304_v9 = vld [vmem:[%s4691_s2 + $0x2f8] sm:$0xff] }
  0x3c   :  { %127 = vmatpush.msrb.mxu1 %v100_v37  ;;  %407 = vmatpush.msrb.mxu0 %v2195_v12  ;;  %v155_v37 = vld [vmem:[%s4692_s0] sm:$0xff]  ;;  %v2336_v12 = vld [vmem:[%s4691_s2 + $0x378] sm:$0xff] }
  0x3e   :  { %128 = vmatpush.msrb.mxu1 %v99_v38  ;;  %408 = vmatpush.msrb.mxu0 %v2194_v15  ;;  %v2238_v38 = vld [vmem:[%s4691_s2 + $0x1e8] sm:$0xff] }
  0x40   :  { %129 = vmatpush.msrb.mxu1 %v98_v39  ;;  %409 = vmatpush.msrb.mxu0 %v2193_v17  ;;  %v2271_v39 = vld [vmem:[%s4691_s2 + $0x270] sm:$0xff]  ;;  %v2300_v17 = vld [vmem:[%s4691_s2 + $0x2d8] sm:$0xff] }
  0x41   :  { %130 = vmatmul.f32.vlgmr.msrb.gmra.mxu1 %v2763_v18  ;;  %410 = vmatmul.f32.vlgmr.msrb.gmra.mxu0 %v2763_v18 }
  0x42   :  { %674 = vmatpush.msra.mxu0 %v2272_v35  ;;  %v2329_v35 = vld [vmem:[%s4691_s2 + $0x340] sm:$0xff] }
  0x44   :  { %675 = vmatpush.msra.mxu0 %v2271_v39  ;;  %v2328_v39 = vld [vmem:[%s4691_s2 + $0x338] sm:$0xff] }
  0x49   :  { %133 = vmatmul.f32.gmra.mxu1 %v2787_v24  ;;  %413 = vmatmul.f32.gmra.mxu0 %v2787_v24 }
  0x51   :  { %136 = vmatmul.f32.gmra.mxu1 %v2811_v30  ;;  %416 = vmatmul.f32.gmra.mxu0 %v2811_v30 }
  0x59   :  { %139 = vmatmul.f32.gmra.mxu1 %v2835_v36  ;;  %419 = vmatmul.f32.gmra.mxu0 %v2835_v36 }
  0x61   :  { %142 = vmatmul.f32.gmra.mxu1 %v2755_v16  ;;  %422 = vmatmul.f32.gmra.mxu0 %v2755_v16 }
  0x69   :  { %145 = vmatmul.f32.gmra.mxu1 %v2779_v22  ;;  %425 = vmatmul.f32.gmra.mxu0 %v2779_v22 }
  0x71   :  { %148 = vmatmul.f32.gmra.mxu1 %v2803_v28  ;;  %428 = vmatmul.f32.gmra.mxu0 %v2803_v28 }
  0x79   :  { %151 = vmatmul.f32.gmra.mxu1 %v2827_v34  ;;  %431 = vmatmul.f32.gmra.mxu0 %v2827_v34 }
  0x9e   :  { %v2856_v40 = vpop.f32.mrf.mxu1 }
  0xa6   :  { %v2858_v41 = vpop.f32.mrf.mxu1 }
  0xae   :  { %v2860_v42 = vpop.f32.mrf.mxu1 }
  0xb6   :  { %v2862_v43 = vpop.f32.mrf.mxu1 }
  0xbe   :  { %v131_v44 = vpop.f32.mrf.mxu1 }
  0xc6   :  { %v134_v45 = vpop.f32.mrf.mxu1 }
  0xce   :  { %v137_v46 = vpop.f32.mrf.mxu1 }
  0xd6   :  { %v140_v47 = vpop.f32.mrf.mxu1 }
  0xde   :  { %v143_v48 = vpop.f32.mrf.mxu1 }
  0xe6   :  { %v146_v49 = vpop.f32.mrf.mxu1 }
  0xee   :  { %v149_v50 = vpop.f32.mrf.mxu1 }
  0xf6   :  { %v152_v51 = vpop.f32.mrf.mxu1 }
  0xf7   :  { %196 = vmatpush.msra.mxu2 %v152_v51  ;;  %2577 = vmatpush.msra.mxu3 %v152_v51  ;;  %v2268_v51 = vld [vmem:[%s4691_s2 + $0x258] sm:$0xff] }
  0xf9   :  { %197 = vmatpush.msra.mxu2 %v149_v50  ;;  %2578 = vmatpush.msra.mxu3 %v149_v50  ;;  %v156_v50 = vld [vmem:[%s4692_s0 + $0x8] sm:$0xff] }
  0xfb   :  { %198 = vmatpush.msra.mxu2 %v146_v49  ;;  %2579 = vmatpush.msra.mxu3 %v146_v49  ;;  %v2234_v49 = vld [vmem:[%s4691_s2 + $0x1c8] sm:$0xff] }
  0xfd   :  { %199 = vmatpush.msra.mxu2 %v143_v48  ;;  %2580 = vmatpush.msra.mxu3 %v143_v48  ;;  %v2269_v48 = vld [vmem:[%s4691_s2 + $0x260] sm:$0xff] }
  0xff   :  { %200 = vmatpush.msra.mxu2 %v140_v47  ;;  %2581 = vmatpush.msra.mxu3 %v140_v47  ;;  %v2235_v47 = vld [vmem:[%s4691_s2 + $0x1d0] sm:$0xff] }
 0x101   :  { %201 = vmatpush.msra.mxu2 %v137_v46  ;;  %2582 = vmatpush.msra.mxu3 %v137_v46  ;;  %v2270_v46 = vld [vmem:[%s4691_s2 + $0x268] sm:$0xff] }
 0x102   :  { %676 = vmatpush.msra.mxu0 %v2270_v46  ;;  %v2292_v46 = vld [vmem:[%s4691_s2 + $0x298] sm:$0xff] }
 0x103   :  { %202 = vmatpush.msra.mxu2 %v134_v45  ;;  %2583 = vmatpush.msra.mxu3 %v134_v45  ;;  %v2236_v45 = vld [vmem:[%s4691_s2 + $0x1d8] sm:$0xff] }
 0x104   :  { %677 = vmatpush.msra.mxu0 %v2269_v48 }
 0x105   :  { %203 = vmatpush.msra.mxu2 %v131_v44  ;;  %2584 = vmatpush.msra.mxu3 %v131_v44  ;;  %v2237_v44 = vld [vmem:[%s4691_s2 + $0x1e0] sm:$0xff] }
 0x106   :  { %2155 = vmatmul.msk.f32.vlgmr.msra.gmra.mxu3 %vm163_vm0, %v157_v57  ;;  %2153 = vmatmul.msk.f32.vlgmr.msra.gmra.mxu2 %vm163_vm0, %v155_v37  ;;  %v2265_v57 = vld [vmem:[%s4691_s2 + $0x240] sm:$0xff] }
 0x107   :  { %254 = vmatpush.msrb.mxu3 %v2176_v59  ;;  %678 = vmatpush.msra.mxu0 %v2268_v51  ;;  %v2264_v59 = vld [vmem:[%s4691_s2 + $0x238] sm:$0xff] }
 0x109   :  { %255 = vmatpush.msrb.mxu3 %v2175_v60  ;;  %679 = vmatpush.msra.mxu0 %v2267_v53  ;;  %v2229_v60 = vld [vmem:[%s4691_s2 + $0x1a0] sm:$0xff]  ;;  %v2324_v53 = vld [vmem:[%s4691_s2 + $0x318] sm:$0xff] }
 0x10b   :  { %256 = vmatpush.msrb.mxu3 %v2174_v63  ;;  %680 = vmatpush.msra.mxu0 %v2266_v55  ;;  %v2262_v63 = vld [vmem:[%s4691_s2 + $0x228] sm:$0xff]  ;;  %v2323_v55 = vld [vmem:[%s4691_s2 + $0x310] sm:$0xff] }
 0x10d   :  { %257 = vmatpush.msrb.mxu3 %v2173_v1  ;;  %681 = vmatpush.msra.mxu0 %v2265_v57  ;;  %v2261_v1 = vld [vmem:[%s4691_s2 + $0x220] sm:$0xff] }
 0x10e   :  { %2156 = vmatmul.msk.f32.gmra.mxu3 %vm163_vm0, %v158_v2  ;;  %2154 = vmatmul.msk.f32.gmra.mxu2 %vm163_vm0, %v156_v50  ;;  %v2226_v2 = vld [vmem:[%s4691_s2 + $0x188] sm:$0xff]  ;;  %v2325_v50 = vld [vmem:[%s4691_s2 + $0x320] sm:$0xff] }
 0x10f   :  { %258 = vmatpush.msrb.mxu3 %v2172_v4  ;;  %682 = vmatpush.msra.mxu0 %v2264_v59  ;;  %v2225_v4 = vld [vmem:[%s4691_s2 + $0x180] sm:$0xff] }
 0x111   :  { %259 = vmatpush.msrb.mxu3 %v2171_v5  ;;  %683 = vmatpush.msra.mxu0 %v2263_v61  ;;  %v2259_v5 = vld [vmem:[%s4691_s2 + $0x210] sm:$0xff] }
 0x113   :  { %260 = vmatpush.msrb.mxu3 %v2170_v8  ;;  %684 = vmatpush.msra.mxu0 %v2262_v63  ;;  %v3107_v8 = vpop.f32.mrf.mxu0 }
 0x115   :  { %261 = vmatpush.msrb.mxu3 %v2169_v10  ;;  %685 = vmatpush.msra.mxu0 %v2261_v1  ;;  %v2303_v10 = vld [vmem:[%s4691_s2 + $0x2f0] sm:$0xff] }
 0x116   :  { %2157 = vmatmul.msk.f32.gmra.mxu3 %vm163_vm0, %v159_v11  ;;  %v2302_v11 = vld [vmem:[%s4691_s2 + $0x2e8] sm:$0xff] }
 0x117   :  { %262 = vmatpush.msrb.mxu3 %v2168_v13  ;;  %686 = vmatpush.msra.mxu0 %v2260_v3  ;;  %v2301_v13 = vld [vmem:[%s4691_s2 + $0x2e0] sm:$0xff] }
 0x119   :  { %263 = vmatpush.msrb.mxu3 %v2167_v14  ;;  %687 = vmatpush.msra.mxu0 %v2259_v5  ;;  %v2335_v14 = vld [vmem:[%s4691_s2 + $0x370] sm:$0xff] }
 0x11b   :  { %264 = vmatpush.msrb.mxu3 %v2166_v19  ;;  %688 = vmatpush.msra.mxu0 %v2258_v6  ;;  %v3130_v15 = vpop.f32.mrf.mxu0  ;;  %v2334_v19 = vld [vmem:[%s4691_s2 + $0x368] sm:$0xff] }
 0x11c   :  { %v2366_v6 = vld [vmem:[%s4691_s2 + $0x3e8] sm:$0xff] }
 0x11d   :  { %265 = vmatpush.msrb.mxu3 %v2165_v20  ;;  %689 = vmatpush.msra.mxu0 %v2257_v7  ;;  %v2299_v20 = vld [vmem:[%s4691_s2 + $0x2d0] sm:$0xff]  ;;  %v2365_v7 = vld [vmem:[%s4691_s2 + $0x3e0] sm:$0xff] }
 0x11e   :  { %2158 = vmatmul.msk.f32.gmra.mxu3 %vm163_vm0, %v160_v21  ;;  %690 = vmatmul.f32.vlgmr.msra.gmra.mxu0 %v2763_v18  ;;  %v2333_v21 = vld [vmem:[%s4691_s2 + $0x360] sm:$0xff] }
 0x11f   :  { %266 = vmatpush.msrb.mxu3 %v2164_v23  ;;  %954 = vmatpush.msrb.mxu0 %v2336_v12  ;;  %v2298_v23 = vld [vmem:[%s4691_s2 + $0x2c8] sm:$0xff] }
 0x121   :  { %267 = vmatpush.msrb.mxu3 %v2163_v25  ;;  %955 = vmatpush.msrb.mxu0 %v2335_v14  ;;  %v2332_v25 = vld [vmem:[%s4691_s2 + $0x358] sm:$0xff]  ;;  %v2361_v14 = vld [vmem:[%s4691_s2 + $0x3c0] sm:$0xff] }
 0x123   :  { %268 = vmatpush.msrb.mxu3 %v2162_v26  ;;  %956 = vmatpush.msrb.mxu0 %v2334_v19  ;;  %v2297_v26 = vld [vmem:[%s4691_s2 + $0x2c0] sm:$0xff] }
 0x125   :  { %269 = vmatpush.msrb.mxu3 %v2161_v27  ;;  %957 = vmatpush.msrb.mxu0 %v2333_v21  ;;  %v2331_v27 = vld [vmem:[%s4691_s2 + $0x350] sm:$0xff] }
 0x126   :  { %2159 = vmatmul.msk.f32.gmra.mxu3 %vm163_vm0, %v161_v29  ;;  %693 = vmatmul.f32.gmra.mxu0 %v2787_v24  ;;  %v3159_v29 = vpop.f32.mrf.mxu0 }
 0x127   :  { %534 = vmatpush.msra.mxu3 %v2240_v32  ;;  %958 = vmatpush.msrb.mxu0 %v2332_v25  ;;  %v2330_v32 = vld [vmem:[%s4691_s2 + $0x348] sm:$0xff]  ;;  %v2357_v25 = vld [vmem:[%s4691_s2 + $0x3a0] sm:$0xff] }
 0x129   :  { %535 = vmatpush.msra.mxu3 %v2239_v33  ;;  %959 = vmatpush.msrb.mxu0 %v2331_v27  ;;  %v2295_v33 = vld [vmem:[%s4691_s2 + $0x2b0] sm:$0xff] }
 0x12b   :  { %536 = vmatpush.msra.mxu3 %v2238_v38  ;;  %960 = vmatpush.msrb.mxu0 %v2330_v32  ;;  %v2294_v38 = vld [vmem:[%s4691_s2 + $0x2a8] sm:$0xff] }
 0x12d   :  { %537 = vmatpush.msra.mxu3 %v2237_v44  ;;  %961 = vmatpush.msrb.mxu0 %v2329_v35  ;;  %v2293_v44 = vld [vmem:[%s4691_s2 + $0x2a0] sm:$0xff] }
 0x12e   :  { %2160 = vmatmul.msk.f32.gmra.mxu3 %vm163_vm0, %v162_v31  ;;  %696 = vmatmul.f32.gmra.mxu0 %v2811_v30  ;;  %v2296_v31 = vld [vmem:[%s4691_s2 + $0x2b8] sm:$0xff]  ;;  %v3195_v48 = vpop.f32.mrf.mxu0  ;;  %v2353_v35 = vld [vmem:[%s4691_s2 + $0x380] sm:$0xff] }
 0x12f   :  { %538 = vmatpush.msra.mxu3 %v2236_v45  ;;  %v2327_v45 = vld [vmem:[%s4691_s2 + $0x330] sm:$0xff]  ;;  %962 = vmatpush.msrb.mxu0 %v2328_v39 }
 0x131   :  { %539 = vmatpush.msra.mxu3 %v2235_v47  ;;  %963 = vmatpush.msrb.mxu0 %v2327_v45  ;;  %v2326_v47 = vld [vmem:[%s4691_s2 + $0x328] sm:$0xff] }
 0x133   :  { %540 = vmatpush.msra.mxu3 %v2234_v49  ;;  %964 = vmatpush.msrb.mxu0 %v2326_v47  ;;  %v2291_v49 = vld [vmem:[%s4691_s2 + $0x290] sm:$0xff]  ;;  %v2209_v47 = vld [vmem:[%s4692_s0 + $0x80] sm:$0xff] }
 0x135   :  { %541 = vmatpush.msra.mxu3 %v2233_v52  ;;  %965 = vmatpush.msrb.mxu0 %v2325_v50  ;;  %v2290_v52 = vld [vmem:[%s4691_s2 + $0x288] sm:$0xff] }
 0x136   :  { %270 = vmatmul.f32.vlgmr.msrb.gmra.mxu3 %v2763_v18  ;;  %699 = vmatmul.f32.gmra.mxu0 %v2835_v36  ;;  %v3222_v57 = vpop.f32.mrf.mxu0 }
 0x137   :  { %542 = vmatpush.msra.mxu3 %v2232_v54  ;;  %v2289_v54 = vld [vmem:[%s4691_s2 + $0x280] sm:$0xff]  ;;  %966 = vmatpush.msrb.mxu0 %v2324_v53 }
 0x139   :  { %543 = vmatpush.msra.mxu3 %v2231_v56  ;;  %967 = vmatpush.msrb.mxu0 %v2323_v55  ;;  %v2322_v56 = vld [vmem:[%s4691_s2 + $0x308] sm:$0xff]  ;;  %v2211_v55 = vld [vmem:[%s4692_s0 + $0x90] sm:$0xff] }
 0x13b   :  { %544 = vmatpush.msra.mxu3 %v2230_v58  ;;  %968 = vmatpush.msrb.mxu0 %v2322_v56  ;;  %v2321_v58 = vld [vmem:[%s4691_s2 + $0x300] sm:$0xff] }
 0x13d   :  { %545 = vmatpush.msra.mxu3 %v2229_v60  ;;  %969 = vmatpush.msrb.mxu0 %v2321_v58  ;;  %v2212_v58 = vld [vmem:[%s4692_s0 + $0x98] sm:$0xff] }
 0x13e   :  { %273 = vmatmul.f32.gmra.mxu3 %v2787_v24  ;;  %702 = vmatmul.f32.gmra.mxu0 %v2755_v16  ;;  %v3231_v60 = vpop.f32.mrf.mxu0 }
 0x13f   :  { %546 = vmatpush.msra.mxu3 %v2228_v62 }
 0x141   :  { %547 = vmatpush.msra.mxu3 %v2227_v0 }
 0x143   :  { %548 = vmatpush.msra.mxu3 %v2226_v2  ;;  %v2368_v2 = vld [vmem:[%s4691_s2 + $0x3f8] sm:$0xff] }
 0x145   :  { %549 = vmatpush.msra.mxu3 %v2225_v4  ;;  %v2367_v4 = vld [vmem:[%s4691_s2 + $0x3f0] sm:$0xff] }
 0x146   :  { %276 = vmatmul.f32.gmra.mxu3 %v2811_v30  ;;  %705 = vmatmul.f32.gmra.mxu0 %v2779_v22  ;;  %v417_v62 = vpop.f32.mrf.mxu0 }
 0x147   :  { %814 = vmatpush.msrb.mxu3 %v2304_v9  ;;  %v2364_v9 = vld [vmem:[%s4691_s2 + $0x3d8] sm:$0xff] }
 0x149   :  { %815 = vmatpush.msrb.mxu3 %v2303_v10 }
 0x14b   :  { %816 = vmatpush.msrb.mxu3 %v2302_v11  ;;  %v2363_v11 = vld [vmem:[%s4691_s2 + $0x3d0] sm:$0xff] }
 0x14d   :  { %817 = vmatpush.msrb.mxu3 %v2301_v13  ;;  %v2362_v13 = vld [vmem:[%s4691_s2 + $0x3c8] sm:$0xff] }
 0x14e   :  { %279 = vmatmul.f32.gmra.mxu3 %v2835_v36  ;;  %708 = vmatmul.f32.gmra.mxu0 %v2803_v28  ;;  %v420_v0 = vpop.f32.mrf.mxu0 }
 0x14f   :  { %818 = vmatpush.msrb.mxu3 %v2300_v17  ;;  %v2360_v17 = vld [vmem:[%s4691_s2 + $0x3b8] sm:$0xff] }
 0x151   :  { %819 = vmatpush.msrb.mxu3 %v2299_v20  ;;  %v2359_v20 = vld [vmem:[%s4691_s2 + $0x3b0] sm:$0xff] }
 0x153   :  { %820 = vmatpush.msrb.mxu3 %v2298_v23  ;;  %v2358_v23 = vld [vmem:[%s4691_s2 + $0x3a8] sm:$0xff] }
 0x155   :  { %821 = vmatpush.msrb.mxu3 %v2297_v26  ;;  %v2356_v26 = vld [vmem:[%s4691_s2 + $0x398] sm:$0xff] }
 0x156   :  { %282 = vmatmul.f32.gmra.mxu3 %v2755_v16  ;;  %711 = vmatmul.f32.gmra.mxu0 %v2827_v34  ;;  %v423_v3 = vpop.f32.mrf.mxu0 }
 0x157   :  { %822 = vmatpush.msrb.mxu3 %v2296_v31  ;;  %v2355_v31 = vld [vmem:[%s4691_s2 + $0x390] sm:$0xff] }
 0x159   :  { %823 = vmatpush.msrb.mxu3 %v2295_v33  ;;  %v2354_v33 = vld [vmem:[%s4691_s2 + $0x388] sm:$0xff] }
 0x15b   :  { %824 = vmatpush.msrb.mxu3 %v2294_v38 }
 0x15d   :  { %825 = vmatpush.msrb.mxu3 %v2293_v44 }
 0x15e   :  { %285 = vmatmul.f32.gmra.mxu3 %v2779_v22  ;;  %970 = vmatmul.f32.vlgmr.msrb.gmra.mxu0 %v2763_v18  ;;  %v426_v10 = vpop.f32.mrf.mxu0 }
 0x15f   :  { %826 = vmatpush.msrb.mxu3 %v2292_v46 }
 0x161   :  { %827 = vmatpush.msrb.mxu3 %v2291_v49 }
 0x163   :  { %828 = vmatpush.msrb.mxu3 %v2290_v52  ;;  %v2210_v52 = vld [vmem:[%s4692_s0 + $0x88] sm:$0xff] }
 0x165   :  { %829 = vmatpush.msrb.mxu3 %v2289_v54 }
 0x166   :  { %288 = vmatmul.f32.gmra.mxu3 %v2803_v28  ;;  %973 = vmatmul.f32.gmra.mxu0 %v2787_v24  ;;  %v429_v19 = vpop.f32.mrf.mxu0 }
 0x16e   :  { %291 = vmatmul.f32.gmra.mxu3 %v2827_v34  ;;  %976 = vmatmul.f32.gmra.mxu0 %v2811_v30  ;;  %v432_v27 = vpop.f32.mrf.mxu0 }
 0x16f   :  { %476 = vmatpush.msra.mxu1 %v432_v27  ;;  %v2241_v27 = vld [vmem:[%s4692_s0 + $0xc0] sm:$0xff] }
 0x171   :  { %477 = vmatpush.msra.mxu1 %v429_v19 }
 0x173   :  { %478 = vmatpush.msra.mxu1 %v426_v10 }
 0x175   :  { %479 = vmatpush.msra.mxu1 %v423_v3 }
 0x176   :  { %550 = vmatmul.f32.vlgmr.msra.gmra.mxu3 %v2763_v18  ;;  %979 = vmatmul.f32.gmra.mxu0 %v2835_v36 }
 0x177   :  { %1094 = vmatpush.msra.mxu3 %v2368_v2  ;;  %480 = vmatpush.msra.mxu1 %v420_v0  ;;  %v2213_v0 = vld [vmem:[%s4692_s0 + $0xa0] sm:$0xff] }
 0x179   :  { %1095 = vmatpush.msra.mxu3 %v2367_v4  ;;  %481 = vmatpush.msra.mxu1 %v417_v62  ;;  %v2214_v4 = vld [vmem:[%s4692_s0 + $0xa8] sm:$0xff] }
 0x17b   :  { %1096 = vmatpush.msra.mxu3 %v2366_v6  ;;  %482 = vmatpush.msra.mxu1 %v3231_v60 }
 0x17d   :  { %1097 = vmatpush.msra.mxu3 %v2365_v7  ;;  %483 = vmatpush.msra.mxu1 %v3222_v57  ;;  %v2215_v7 = vld [vmem:[%s4692_s0 + $0xb0] sm:$0xff] }
 0x17e   :  { %553 = vmatmul.f32.gmra.mxu3 %v2787_v24  ;;  %982 = vmatmul.f32.gmra.mxu0 %v2755_v16 }
 0x17f   :  { %1098 = vmatpush.msra.mxu3 %v2364_v9  ;;  %2217 = vmatmul.msk.f32.vlgmr.msra.gmra.mxu1 %vm163_vm0, %v2209_v47  ;;  %v2278_v47 = vld [vmem:[%s4692_s0 + $0x128] sm:$0xff] }
 0x181   :  { %1099 = vmatpush.msra.mxu3 %v2363_v11  ;;  %v2216_v11 = vld [vmem:[%s4692_s0 + $0xb8] sm:$0xff] }
 0x183   :  { %1100 = vmatpush.msra.mxu3 %v2362_v13 }
 0x185   :  { %1101 = vmatpush.msra.mxu3 %v2361_v14  ;;  %v2273_v14 = vld [vmem:[%s4692_s0 + $0x100] sm:$0xff] }
 0x186   :  { %556 = vmatmul.f32.gmra.mxu3 %v2811_v30  ;;  %985 = vmatmul.f32.gmra.mxu0 %v2779_v22 }
 0x187   :  { %1102 = vmatpush.msra.mxu3 %v2360_v17  ;;  %2218 = vmatmul.msk.f32.gmra.mxu1 %vm163_vm0, %v2210_v52  ;;  %v2279_v52 = vld [vmem:[%s4692_s0 + $0x130] sm:$0xff] }
 0x189   :  { %v3173_v37 = vpop.f32.mrf.mxu3  ;;  %1103 = vmatpush.msra.mxu3 %v2359_v20  ;;  %v2274_v20 = vld [vmem:[%s4692_s0 + $0x108] sm:$0xff] }
 0x18b   :  { %1104 = vmatpush.msra.mxu3 %v2358_v23 }
 0x18d   :  { %1105 = vmatpush.msra.mxu3 %v2357_v25  ;;  %v2275_v25 = vld [vmem:[%s4692_s0 + $0x110] sm:$0xff] }
 0x18e   :  { %559 = vmatmul.f32.gmra.mxu3 %v2835_v36  ;;  %988 = vmatmul.f32.gmra.mxu0 %v2803_v28 }
 0x18f   :  { %1106 = vmatpush.msra.mxu3 %v2356_v26  ;;  %2219 = vmatmul.msk.f32.gmra.mxu1 %vm163_vm0, %v2211_v55  ;;  %v2280_v55 = vld [vmem:[%s4692_s0 + $0x138] sm:$0xff] }
 0x191   :  { %v3203_v51 = vpop.f32.mrf.mxu3  ;;  %1107 = vmatpush.msra.mxu3 %v2355_v31 }
 0x193   :  { %1108 = vmatpush.msra.mxu3 %v2354_v33 }
 0x195   :  { %1109 = vmatpush.msra.mxu3 %v2353_v35  ;;  %v2242_v35 = vld [vmem:[%s4692_s0 + $0xc8] sm:$0xff] }
 0x196   :  { %562 = vmatmul.f32.gmra.mxu3 %v2755_v16  ;;  %991 = vmatmul.f32.gmra.mxu0 %v2827_v34 }
 0x197   :  { %2220 = vmatmul.msk.f32.gmra.mxu1 %vm163_vm0, %v2212_v58 }
 0x199   :  { %v3227_v59 = vpop.f32.mrf.mxu3 }
 0x19b   :  { %v3305_v38 = vpop.f32.mrf.mxu0 }
 0x19e   :  { %565 = vmatmul.f32.gmra.mxu3 %v2779_v22 }
 0x19f   :  { %2221 = vmatmul.msk.f32.gmra.mxu1 %vm163_vm0, %v2213_v0  ;;  %v3465_v0 = vpop.f32.mrf.mxu2 }
 0x1a1   :  { %v3233_v61 = vpop.f32.mrf.mxu3 }
 0x1a3   :  { %v694_v44 = vpop.f32.mrf.mxu0 }
 0x1a6   :  { %568 = vmatmul.f32.gmra.mxu3 %v2803_v28 }
 0x1a7   :  { %2222 = vmatmul.msk.f32.gmra.mxu1 %vm163_vm0, %v2214_v4  ;;  %v3478_v4 = vpop.f32.mrf.mxu2 }
 0x1a9   :  { %v3237_v63 = vpop.f32.mrf.mxu3 }
 0x1ab   :  { %v697_v46 = vpop.f32.mrf.mxu0 }
 0x1ae   :  { %571 = vmatmul.f32.gmra.mxu3 %v2827_v34 }
 0x1af   :  { %2223 = vmatmul.msk.f32.gmra.mxu1 %vm163_vm0, %v2215_v7 }
 0x1b1   :  { %v3241_v1 = vpop.f32.mrf.mxu3 }
 0x1b3   :  { %v700_v50 = vpop.f32.mrf.mxu0 }
 0x1b6   :  { %830 = vmatmul.f32.vlgmr.msrb.gmra.mxu3 %v2763_v18 }
 0x1b7   :  { %2224 = vmatmul.msk.f32.gmra.mxu1 %vm163_vm0, %v2216_v11 }
 0x1b9   :  { %v3251_v5 = vpop.f32.mrf.mxu3 }
 0x1bb   :  { %v703_v54 = vpop.f32.mrf.mxu0 }
 0x1be   :  { %833 = vmatmul.f32.gmra.mxu3 %v2787_v24 }
 0x1c1   :  { %v3267_v12 = vpop.f32.mrf.mxu3 }
 0x1c3   :  { %v706_v57 = vpop.f32.mrf.mxu0 }
 0x1c6   :  { %836 = vmatmul.f32.gmra.mxu3 %v2811_v30 }
 0x1c9   :  { %v277_v21 = vpop.f32.mrf.mxu3 }
 0x1cb   :  { %v709_v62 = vpop.f32.mrf.mxu0 }
 0x1ce   :  { %839 = vmatmul.f32.gmra.mxu3 %v2835_v36 }
 0x1d1   :  { %v280_v32 = vpop.f32.mrf.mxu3 }
 0x1d3   :  { %v712_v3 = vpop.f32.mrf.mxu0 }
 0x1d4   :  { %756 = vmatpush.msrb.mxu1 %v712_v3 }
 0x1d6   :  { %842 = vmatmul.f32.gmra.mxu3 %v2755_v16  ;;  %757 = vmatpush.msrb.mxu1 %v709_v62 }
 0x1d8   :  { %758 = vmatpush.msrb.mxu1 %v706_v57  ;;  %v2337_v57 = vld [vmem:[%s4692_s0 + $0x180] sm:$0xff] }
 0x1d9   :  { %v283_v39 = vpop.f32.mrf.mxu3 }
 0x1da   :  { %759 = vmatpush.msrb.mxu1 %v703_v54  ;;  %v2245_v54 = vld [vmem:[%s4692_s0 + $0xe0] sm:$0xff] }
 0x1db   :  { %v3362_v6 = vpop.f32.mrf.mxu0 }
 0x1dc   :  { %760 = vmatpush.msrb.mxu1 %v700_v50  ;;  %v2244_v50 = vld [vmem:[%s4692_s0 + $0xd8] sm:$0xff] }
 0x1de   :  { %845 = vmatmul.f32.gmra.mxu3 %v2779_v22  ;;  %761 = vmatpush.msrb.mxu1 %v697_v46 }
 0x1e0   :  { %762 = vmatpush.msrb.mxu1 %v694_v44 }
 0x1e1   :  { %v286_v45 = vpop.f32.mrf.mxu3 }
 0x1e2   :  { %763 = vmatpush.msrb.mxu1 %v3305_v38 }
 0x1e3   :  { %v974_v10 = vpop.f32.mrf.mxu0  ;;  %2281 = vmatmul.msk.f32.vlgmr.msrb.gmra.mxu1 %vm163_vm0, %v2273_v14  ;;  %v2342_v14 = vld [vmem:[%s4692_s0 + $0x1a8] sm:$0xff] }
 0x1e6   :  { %848 = vmatmul.f32.gmra.mxu3 %v2803_v28 }
 0x1e9   :  { %v289_v49 = vpop.f32.mrf.mxu3 }
 0x1eb   :  { %v977_v13 = vpop.f32.mrf.mxu0  ;;  %2282 = vmatmul.msk.f32.gmra.mxu1 %vm163_vm0, %v2274_v20 }
 0x1ee   :  { %851 = vmatmul.f32.gmra.mxu3 %v2827_v34 }
 0x1f1   :  { %v292_v53 = vpop.f32.mrf.mxu3 }
 0x1f2   :  { %336 = vmatpush.msrb.mxu2 %v292_v53 }
 0x1f3   :  { %v980_v19 = vpop.f32.mrf.mxu0  ;;  %2283 = vmatmul.msk.f32.gmra.mxu1 %vm163_vm0, %v2275_v25 }
 0x1f4   :  { %337 = vmatpush.msrb.mxu2 %v289_v49 }
 0x1f6   :  { %338 = vmatpush.msrb.mxu2 %v286_v45  ;;  %1110 = vmatmul.f32.vlgmr.msra.gmra.mxu3 %v2763_v18  ;;  %v2177_v18 = vld [vmem:[%s4692_s0 + $0x40] sm:$0xff]  ;;  %v2243_v45 = vld [vmem:[%s4692_s0 + $0xd0] sm:$0xff] }
 0x1f8   :  { %339 = vmatpush.msrb.mxu2 %v283_v39  ;;  %v2277_v39 = vld [vmem:[%s4692_s0 + $0x120] sm:$0xff] }
 0x1f9   :  { %v3324_v56 = vpop.f32.mrf.mxu3 }
 0x1fa   :  { %340 = vmatpush.msrb.mxu2 %v280_v32  ;;  %v2276_v32 = vld [vmem:[%s4692_s0 + $0x118] sm:$0xff] }
 0x1fb   :  { %v983_v23 = vpop.f32.mrf.mxu0  ;;  %2284 = vmatmul.msk.f32.gmra.mxu1 %vm163_vm0, %v2276_v32  ;;  %v2344_v32 = vld [vmem:[%s4692_s0 + $0x1b8] sm:$0xff] }
 0x1fc   :  { %341 = vmatpush.msrb.mxu2 %v277_v21 }
 0x1fe   :  { %342 = vmatpush.msrb.mxu2 %v3267_v12  ;;  %1113 = vmatmul.f32.gmra.mxu3 %v2787_v24  ;;  %v2178_v24 = vld [vmem:[%s4692_s0 + $0x48] sm:$0xff] }
 0x200   :  { %343 = vmatpush.msrb.mxu2 %v3251_v5 }
 0x201   :  { %2185 = vmatmul.msk.f32.vlgmr.msrb.gmra.mxu2 %vm163_vm0, %v2177_v18  ;;  %v3337_v60 = vpop.f32.mrf.mxu3  ;;  %v2246_v18 = vld [vmem:[%s4692_s0 + $0xe8] sm:$0xff] }
 0x203   :  { %v986_v31 = vpop.f32.mrf.mxu0  ;;  %2285 = vmatmul.msk.f32.gmra.mxu1 %vm163_vm0, %v2277_v39 }
 0x206   :  { %1116 = vmatmul.f32.gmra.mxu3 %v2811_v30  ;;  %v2179_v30 = vld [vmem:[%s4692_s0 + $0x50] sm:$0xff] }
 0x209   :  { %2186 = vmatmul.msk.f32.gmra.mxu2 %vm163_vm0, %v2178_v24  ;;  %v557_v2 = vpop.f32.mrf.mxu3  ;;  %v2338_v24 = vld [vmem:[%s4692_s0 + $0x188] sm:$0xff] }
 0x20b   :  { %v989_v38 = vpop.f32.mrf.mxu0  ;;  %2286 = vmatmul.msk.f32.gmra.mxu1 %vm163_vm0, %v2278_v47 }
 0x20e   :  { %1119 = vmatmul.f32.gmra.mxu3 %v2835_v36  ;;  %v2180_v36 = vld [vmem:[%s4692_s0 + $0x58] sm:$0xff] }
 0x211   :  { %2187 = vmatmul.msk.f32.gmra.mxu2 %vm163_vm0, %v2179_v30  ;;  %v560_v5 = vpop.f32.mrf.mxu3  ;;  %v2339_v30 = vld [vmem:[%s4692_s0 + $0x190] sm:$0xff] }
 0x213   :  { %v992_v46 = vpop.f32.mrf.mxu0  ;;  %2287 = vmatmul.msk.f32.gmra.mxu1 %vm163_vm0, %v2279_v52 }
 0x214   :  { %1036 = vmatpush.msra.mxu1 %v992_v46 }
 0x216   :  { %1122 = vmatmul.f32.gmra.mxu3 %v2755_v16  ;;  %v2181_v16 = vld [vmem:[%s4692_s0 + $0x60] sm:$0xff]  ;;  %1037 = vmatpush.msra.mxu1 %v989_v38 }
 0x218   :  { %1038 = vmatpush.msra.mxu1 %v986_v31 }
 0x219   :  { %2188 = vmatmul.msk.f32.gmra.mxu2 %vm163_vm0, %v2180_v36  ;;  %v563_v9 = vpop.f32.mrf.mxu3  ;;  %v2340_v36 = vld [vmem:[%s4692_s0 + $0x198] sm:$0xff] }
 0x21a   :  { %1039 = vmatpush.msra.mxu1 %v983_v23  ;;  %v2343_v23 = vld [vmem:[%s4692_s0 + $0x1b0] sm:$0xff] }
 0x21b   :  { %2288 = vmatmul.msk.f32.gmra.mxu1 %vm163_vm0, %v2280_v55 }
 0x21c   :  { %1040 = vmatpush.msra.mxu1 %v980_v19 }
 0x21e   :  { %1125 = vmatmul.f32.gmra.mxu3 %v2779_v22  ;;  %v2182_v22 = vld [vmem:[%s4692_s0 + $0x68] sm:$0xff]  ;;  %1041 = vmatpush.msra.mxu1 %v977_v13 }
 0x220   :  { %1042 = vmatpush.msra.mxu1 %v974_v10 }
 0x221   :  { %2189 = vmatmul.msk.f32.gmra.mxu2 %vm163_vm0, %v2181_v16  ;;  %v566_v12 = vpop.f32.mrf.mxu3  ;;  %v2341_v16 = vld [vmem:[%s4692_s0 + $0x1a0] sm:$0xff] }
 0x222   :  { %1043 = vmatpush.msra.mxu1 %v3362_v6 }
 0x223   :  { %2345 = vmatmul.msk.f32.vlgmr.msra.gmra.mxu1 %vm163_vm0, %v2337_v57 }
 0x226   :  { %1128 = vmatmul.f32.gmra.mxu3 %v2803_v28  ;;  %v2183_v28 = vld [vmem:[%s4692_s0 + $0x70] sm:$0xff] }
 0x229   :  { %2190 = vmatmul.msk.f32.gmra.mxu2 %vm163_vm0, %v2182_v22  ;;  %v569_v17 = vpop.f32.mrf.mxu3  ;;  %v2307_v22 = vld [vmem:[%s4692_s0 + $0x150] sm:$0xff] }
 0x22b   :  { %2346 = vmatmul.msk.f32.gmra.mxu1 %vm163_vm0, %v2338_v24 }
 0x22e   :  { %1131 = vmatmul.f32.gmra.mxu3 %v2827_v34  ;;  %v2184_v34 = vld [vmem:[%s4692_s0 + $0x78] sm:$0xff] }
 0x231   :  { %2191 = vmatmul.msk.f32.gmra.mxu2 %vm163_vm0, %v2183_v28  ;;  %v572_v21 = vpop.f32.mrf.mxu3  ;;  %v3517_v28 = vpop.f32.mrf.mxu1 }
 0x232   :  { %616 = vmatpush.msra.mxu2 %v572_v21 }
 0x233   :  { %2347 = vmatmul.msk.f32.gmra.mxu1 %vm163_vm0, %v2339_v30  ;;  %v2371_v30 = vld [vmem:[%s4692_s0 + $0x1d0] sm:$0xff] }
 0x234   :  { %617 = vmatpush.msra.mxu2 %v569_v17 }
 0x236   :  { %618 = vmatpush.msra.mxu2 %v566_v12  ;;  %v3506_v12 = vld [vmem:[%s4689_s4] ss:$0 sm:$0xff] }
 0x237   :  { %v81_v13 = vadd.f32 %v3506_v12, %v3159_v29  ;;  %v2308_v29 = vld [vmem:[%s4692_s0 + $0x158] sm:$0xff]  ;;  %v90_v46 = vadd.f32 %v3506_v12, %v2858_v41 }
 0x238   :  { %619 = vmatpush.msra.mxu2 %v563_v9  ;;  %v2306_v9 = vld [vmem:[%s4692_s0 + $0x148] sm:$0xff] }
 0x239   :  { %2192 = vmatmul.msk.f32.gmra.mxu2 %vm163_vm0, %v2184_v34  ;;  %v3404_v26 = vpop.f32.mrf.mxu3  ;;  %v231_v19 = vadd.f32 %v3173_v37, %v81_v13  ;;  %v84_v34 = vadd.f32 %v3506_v12, %v3195_v48  ;;  %v2309_v48 = vld [vmem:[%s4692_s0 + $0x160] sm:$0xff]  ;;  %v234_v47 = vadd.f32 %v3233_v61, %v90_v46  ;;  %v1299_v46 = vld [vmem:[%s4694_s5 + $0x68] sm:$0xff] }
 0x23a   :  { %620 = vmatpush.msra.mxu2 %v560_v5  ;;  %v2305_v5 = vld [vmem:[%s4692_s0 + $0x140] sm:$0xff] }
 0x23b   :  { %2348 = vmatmul.msk.f32.gmra.mxu1 %vm163_vm0, %v2340_v36  ;;  %v232_v37 = vadd.f32 %v3203_v51, %v84_v34 }
 0x23c   :  { %621 = vmatpush.msra.mxu2 %v557_v2  ;;  %v2248_v2 = vld [vmem:[%s4692_s0 + $0xf8] sm:$0xff] }
 0x23e   :  { %622 = vmatpush.msra.mxu2 %v3337_v60  ;;  %v2247_v60 = vld [vmem:[%s4692_s0 + $0xf0] sm:$0xff] }
 0x240   :  { %623 = vmatpush.msra.mxu2 %v3324_v56 }
 0x241   :  { %2249 = vmatmul.msk.f32.vlgmr.msra.gmra.mxu2 %vm163_vm0, %v2241_v27  ;;  %v834_v33 = vpop.f32.mrf.mxu3 }
 0x243   :  { %2349 = vmatmul.msk.f32.gmra.mxu1 %vm163_vm0, %v2341_v16 }
 0x249   :  { %2250 = vmatmul.msk.f32.gmra.mxu2 %vm163_vm0, %v2242_v35  ;;  %v837_v44 = vpop.f32.mrf.mxu3 }
 0x24b   :  { %2350 = vmatmul.msk.f32.gmra.mxu1 %vm163_vm0, %v2342_v14 }
 0x251   :  { %2251 = vmatmul.msk.f32.gmra.mxu2 %vm163_vm0, %v2243_v45  ;;  %v840_v49 = vpop.f32.mrf.mxu3  ;;  %v2310_v45 = vld [vmem:[%s4692_s0 + $0x168] sm:$0xff] }
 0x253   :  { %2351 = vmatmul.msk.f32.gmra.mxu1 %vm163_vm0, %v2343_v23 }
 0x259   :  { %2252 = vmatmul.msk.f32.gmra.mxu2 %vm163_vm0, %v2244_v50  ;;  %v843_v53 = vpop.f32.mrf.mxu3 }
 0x25b   :  { %2352 = vmatmul.msk.f32.gmra.mxu1 %vm163_vm0, %v2344_v32 }
 0x261   :  { %2253 = vmatmul.msk.f32.gmra.mxu2 %vm163_vm0, %v2245_v54  ;;  %v846_v56 = vpop.f32.mrf.mxu3 }
 0x269   :  { %2254 = vmatmul.msk.f32.gmra.mxu2 %vm163_vm0, %v2246_v18  ;;  %v849_v58 = vpop.f32.mrf.mxu3  ;;  %v96_v18 = vadd.f32 %v3506_v12, %v2862_v43 }
 0x271   :  { %2255 = vmatmul.msk.f32.gmra.mxu2 %vm163_vm0, %v2247_v60  ;;  %v852_v62 = vpop.f32.mrf.mxu3  ;;  %v2369_v60 = vld [vmem:[%s4692_s0 + $0x1c0] sm:$0xff] }
 0x272   :  { %896 = vmatpush.msrb.mxu2 %v852_v62 }
 0x274   :  { %897 = vmatpush.msrb.mxu2 %v849_v58 }
 0x276   :  { %898 = vmatpush.msrb.mxu2 %v846_v56  ;;  %v2312_v56 = vld [vmem:[%s4692_s0 + $0x178] sm:$0xff] }
 0x278   :  { %899 = vmatpush.msrb.mxu2 %v843_v53  ;;  %v93_v53 = vadd.f32 %v3506_v12, %v2860_v42 }
 0x279   :  { %2256 = vmatmul.msk.f32.gmra.mxu2 %vm163_vm0, %v2248_v2  ;;  %v3475_v3 = vpop.f32.mrf.mxu3 }
 0x27a   :  { %900 = vmatpush.msrb.mxu2 %v840_v49  ;;  %v235_v54 = vadd.f32 %v3237_v63, %v93_v53  ;;  %v236_v63 = vadd.f32 %v3241_v1, %v96_v18  ;;  %v2370_v1 = vld [vmem:[%s4692_s0 + $0x1c8] sm:$0xff]  ;;  %v1236_v53 = vld [vmem:[%s4693_s6 + $0x58] sm:$0xff]  ;;  %v2403_v18 = vld [vmem:[%s4694_s5 + $0xd0] sm:$0xff] }
 0x27c   :  { %901 = vmatpush.msrb.mxu2 %v837_v44 }
 0x27e   :  { %902 = vmatpush.msrb.mxu2 %v834_v33  ;;  %v87_v33 = vadd.f32 %v3506_v12, %v2856_v40 }
 0x280   :  { %903 = vmatpush.msrb.mxu2 %v3404_v26  ;;  %v3534_v26 = vpop.f32.mrf.mxu1  ;;  %v233_v51 = vadd.f32 %v3227_v59, %v87_v33  ;;  %v2311_v59 = vld [vmem:[%s4692_s0 + $0x170] sm:$0xff] }
 0x281   :  { %2313 = vmatmul.msk.f32.vlgmr.msrb.gmra.mxu2 %vm163_vm0, %v2305_v5  ;;  %v3488_v6 = vpop.f32.mrf.mxu3  ;;  %v2372_v5 = vld [vmem:[%s4692_s0 + $0x1d8] sm:$0xff]  ;;  %v1239_v33 = vld [vmem:[%s4693_s6 + $0x70] sm:$0xff] }
 0x284   :  { %v3491_v7 = vpop.f32.mrf.mxu2 }
 0x288   :  { %v3551_v44 = vpop.f32.mrf.mxu1 }
 0x289   :  { %2314 = vmatmul.msk.f32.gmra.mxu2 %vm163_vm0, %v2306_v9  ;;  %v1117_v10 = vpop.f32.mrf.mxu3  ;;  %v2373_v9 = vld [vmem:[%s4692_s0 + $0x1e0] sm:$0xff] }
 0x28c   :  { %v3501_v11 = vpop.f32.mrf.mxu2 }
 0x290   :  { %v3565_v52 = vpop.f32.mrf.mxu1 }
 0x291   :  { %2315 = vmatmul.msk.f32.gmra.mxu2 %vm163_vm0, %v2307_v22  ;;  %v1120_v17 = vpop.f32.mrf.mxu3  ;;  %v2374_v22 = vld [vmem:[%s4692_s0 + $0x1e8] sm:$0xff] }
 0x294   :  { %v351_v20 = vpop.f32.mrf.mxu2 }
 0x295   :  { %v3521_v21 = vadd.f32 %v351_v20, %v231_v19 }
 0x298   :  { %v3579_v42 = vpop.f32.mrf.mxu1 }
 0x299   :  { %2316 = vmatmul.msk.f32.gmra.mxu2 %vm163_vm0, %v2308_v29  ;;  %v1123_v25 = vpop.f32.mrf.mxu3  ;;  %v2376_v29 = vld [vmem:[%s4692_s0 + $0x1f8] sm:$0xff] }
 0x29c   :  { %v354_v27 = vpop.f32.mrf.mxu2 }
 0x29d   :  { %v3536_v31 = vadd.f32 %v354_v27, %v232_v37  ;;  %v1240_v37 = vld [vmem:[%s4693_s6 + $0x78] sm:$0xff] }
 0x29e   :  { %v1301_v27 = vld [vmem:[%s4694_s5 + $0x78] sm:$0xff]  ;;  %1245 = vmatpush.msra.mxu0 %v1240_v37 }
 0x29f   :  { %1302 = vmatpush.msrb.mxu1 %v1301_v27  ;;  %v2400_v37 = vld [vmem:[%s4694_s5 + $0xb8] sm:$0xff]  ;;  %v1231_v27 = vld [vmem:[%s4693_s6 + $0x30] sm:$0xff] }
 0x2a0   :  { %v3590_v43 = vpop.f32.mrf.mxu1  ;;  %1246 = vmatpush.msra.mxu0 %v1239_v33  ;;  %v2399_v33 = vld [vmem:[%s4694_s5 + $0xb0] sm:$0xff] }
 0x2a1   :  { %2317 = vmatmul.msk.f32.gmra.mxu2 %vm163_vm0, %v2309_v48  ;;  %v1126_v35 = vpop.f32.mrf.mxu3  ;;  %v2408_v48 = vld [vmem:[%s4694_s5 + $0xf8] sm:$0xff] }
 0x2a4   :  { %v357_v38 = vpop.f32.mrf.mxu2 }
 0x2a5   :  { %v3549_v39 = vadd.f32 %v357_v38, %v233_v51  ;;  %v2407_v51 = vld [vmem:[%s4694_s5 + $0xf0] sm:$0xff] }
 0x2a8   :  { %v3600_v2 = vpop.f32.mrf.mxu1 }
 0x2a9   :  { %2318 = vmatmul.msk.f32.gmra.mxu2 %vm163_vm0, %v2310_v45  ;;  %v1129_v40 = vpop.f32.mrf.mxu3  ;;  %v1238_v45 = vld [vmem:[%s4693_s6 + $0x68] sm:$0xff] }
 0x2aa   :  { %1247 = vmatpush.msra.mxu0 %v1238_v45  ;;  %v1291_v45 = vld [vmem:[%s4694_s5 + $0x28] sm:$0xff] }
 0x2ac   :  { %v360_v49 = vpop.f32.mrf.mxu2 }
 0x2ad   :  { %v3560_v50 = vadd.f32 %v360_v49, %v234_v47  ;;  %v1237_v47 = vld [vmem:[%s4693_s6 + $0x60] sm:$0xff] }
 0x2ae   :  { %v1298_v49 = vld [vmem:[%s4694_s5 + $0x60] sm:$0xff]  ;;  %1248 = vmatpush.msra.mxu0 %v1237_v47 }
 0x2af   :  { %v1229_v47 = vld [vmem:[%s4693_s6 + $0x20] sm:$0xff] }
 0x2b0   :  { %v3611_v36 = vpop.f32.mrf.mxu1  ;;  %1249 = vmatpush.msra.mxu0 %v1236_v53  ;;  %v1228_v53 = vld [vmem:[%s4693_s6 + $0x18] sm:$0xff] }
 0x2b1   :  { %2319 = vmatmul.msk.f32.gmra.mxu2 %vm163_vm0, %v2311_v59  ;;  %v1132_v41 = vpop.f32.mrf.mxu3  ;;  %v2405_v59 = vld [vmem:[%s4694_s5 + $0xe0] sm:$0xff] }
 0x2b2   :  { %1176 = vmatpush.msra.mxu2 %v1132_v41  ;;  %v1297_v41 = vld [vmem:[%s4694_s5 + $0x58] sm:$0xff] }
 0x2b4   :  { %v363_v55 = vpop.f32.mrf.mxu2  ;;  %1177 = vmatpush.msra.mxu2 %v1129_v40  ;;  %v2406_v40 = vld [vmem:[%s4694_s5 + $0xe8] sm:$0xff] }
 0x2b5   :  { %v3571_v61 = vadd.f32 %v363_v55, %v235_v54  ;;  %v2404_v54 = vld [vmem:[%s4694_s5 + $0xd8] sm:$0xff]  ;;  %v1235_v55 = vld [vmem:[%s4693_s6 + $0x50] sm:$0xff] }
 0x2b6   :  { %1178 = vmatpush.msra.mxu2 %v1126_v35  ;;  %v1300_v35 = vld [vmem:[%s4694_s5 + $0x70] sm:$0xff]  ;;  %1250 = vmatpush.msra.mxu0 %v1235_v55 }
 0x2b7   :  { %1303 = vmatpush.msrb.mxu1 %v1300_v35  ;;  %v1227_v55 = vld [vmem:[%s4693_s6 + $0x10] sm:$0xff] }
 0x2b8   :  { %1179 = vmatpush.msra.mxu2 %v1123_v25  ;;  %v3620_v16 = vpop.f32.mrf.mxu1 }
 0x2b9   :  { %2320 = vmatmul.msk.f32.gmra.mxu2 %vm163_vm0, %v2312_v56  ;;  %1304 = vmatpush.msrb.mxu1 %v1299_v46  ;;  %v1296_v56 = vld [vmem:[%s4694_s5 + $0x50] sm:$0xff]  ;;  %v2398_v46 = vld [vmem:[%s4694_s5 + $0xa8] sm:$0xff] }
 0x2ba   :  { %1180 = vmatpush.msra.mxu2 %v1120_v17  ;;  %v2375_v17 = vld [vmem:[%s4692_s0 + $0x1f0] sm:$0xff] }
 0x2bb   :  { %1305 = vmatpush.msrb.mxu1 %v1298_v49  ;;  %v1290_v49 = vld [vmem:[%s4694_s5 + $0x20] sm:$0xff] }
 0x2bc   :  { %v366_v57 = vpop.f32.mrf.mxu2  ;;  %1181 = vmatpush.msra.mxu2 %v1117_v10 }
 0x2bd   :  { %v3582_v58 = vadd.f32 %v366_v57, %v236_v63  ;;  %1306 = vmatpush.msrb.mxu1 %v1297_v41  ;;  %v1289_v41 = vld [vmem:[%s4694_s5 + $0x18] sm:$0xff] }
 0x2be   :  { %1182 = vmatpush.msra.mxu2 %v3488_v6 }
 0x2bf   :  { %1307 = vmatpush.msrb.mxu1 %v1296_v56  ;;  %v1288_v56 = vld [vmem:[%s4694_s5 + $0x10] sm:$0xff] }
 0x2c0   :  { %1183 = vmatpush.msra.mxu2 %v3475_v3  ;;  %v3628_v13 = vpop.f32.mrf.mxu1 }
 0x2c1   :  { %2377 = vmatmul.msk.f32.vlgmr.msra.gmra.mxu2 %vm163_vm0, %v2369_v60  ;;  %v1234_v60 = vld [vmem:[%s4693_s6 + $0x48] sm:$0xff] }
 0x2c2   :  { %1409 = vmatpush.msrb.mxu2 %v2408_v48  ;;  %1251 = vmatpush.msra.mxu0 %v1234_v60  ;;  %v1292_v48 = vld [vmem:[%s4694_s5 + $0x30] sm:$0xff] }
 0x2c4   :  { %v3592_v24 = vpop.f32.mrf.mxu2  ;;  %1410 = vmatpush.msrb.mxu2 %v2407_v51  ;;  %v1230_v51 = vld [vmem:[%s4693_s6 + $0x28] sm:$0xff] }
 0x2c6   :  { %1411 = vmatpush.msrb.mxu2 %v2406_v40 }
 0x2c8   :  { %v3638_v20 = vpop.f32.mrf.mxu1  ;;  %1412 = vmatpush.msrb.mxu2 %v2405_v59  ;;  %v2397_v59 = vld [vmem:[%s4694_s5 + $0xa0] sm:$0xff] }
 0x2c9   :  { %2378 = vmatmul.msk.f32.gmra.mxu2 %vm163_vm0, %v2370_v1  ;;  %v1295_v1 = vld [vmem:[%s4694_s5 + $0x48] sm:$0xff] }
 0x2ca   :  { %1413 = vmatpush.msrb.mxu2 %v2404_v54  ;;  %1308 = vmatpush.msrb.mxu1 %v1295_v1  ;;  %v2396_v54 = vld [vmem:[%s4694_s5 + $0x98] sm:$0xff]  ;;  %v1226_v1 = vld [vmem:[%s4693_s6 + $0x8] sm:$0xff] }
 0x2cc   :  { %v3598_v62 = vpop.f32.mrf.mxu2  ;;  %1414 = vmatpush.msrb.mxu2 %v2403_v18  ;;  %v2395_v18 = vld [vmem:[%s4694_s5 + $0x90] sm:$0xff] }
 0x2d0   :  { %v3646_v23 = vpop.f32.mrf.mxu1 }
 0x2d1   :  { %2379 = vmatmul.msk.f32.gmra.mxu2 %vm163_vm0, %v2371_v30  ;;  %v2402_v30 = vld [vmem:[%s4694_s5 + $0xc8] sm:$0xff] }
 0x2d2   :  { %1415 = vmatpush.msrb.mxu2 %v2402_v30  ;;  %v1287_v30 = vld [vmem:[%s4694_s5 + $0x8] sm:$0xff] }
 0x2d4   :  { %v3606_v3 = vpop.f32.mrf.mxu2 }
 0x2d8   :  { %v3659_v32 = vpop.f32.mrf.mxu1 }
 0x2d9   :  { %2380 = vmatmul.msk.f32.gmra.mxu2 %vm163_vm0, %v2372_v5  ;;  %v1233_v5 = vld [vmem:[%s4693_s6 + $0x40] sm:$0xff] }
 0x2da   :  { %1252 = vmatpush.msra.mxu0 %v1233_v5  ;;  %v2394_v5 = vld [vmem:[%s4694_s5 + $0x88] sm:$0xff] }
 0x2dc   :  { %v3614_v6 = vpop.f32.mrf.mxu2 }
 0x2e0   :  { %v3708_v63 = vpop.f32.mrf.mxu1 }
 0x2e1   :  { %2381 = vmatmul.msk.f32.gmra.mxu2 %vm163_vm0, %v2373_v9  ;;  %v1294_v9 = vld [vmem:[%s4694_s5 + $0x40] sm:$0xff] }
 0x2e2   :  { %1309 = vmatpush.msrb.mxu1 %v1294_v9  ;;  %v1225_v9 = vld [vmem:[%s4693_s6] sm:$0xff] }
 0x2e4   :  { %v3622_v10 = vpop.f32.mrf.mxu2 }
 0x2e8   :  { %v3759_v40 = vpop.f32.mrf.mxu1 }
 0x2e9   :  { %2382 = vmatmul.msk.f32.gmra.mxu2 %vm163_vm0, %v2374_v22  ;;  %v2401_v22 = vld [vmem:[%s4694_s5 + $0xc0] sm:$0xff] }
 0x2ea   :  { %1416 = vmatpush.msrb.mxu2 %v2401_v22  ;;  %v1286_v22 = vld [vmem:[%s4694_s5] sm:$0xff] }
 0x2ec   :  { %v3630_v14 = vpop.f32.mrf.mxu2  ;;  %1417 = vmatpush.msrb.mxu2 %v2400_v37 }
 0x2ee   :  { %1418 = vmatpush.msrb.mxu2 %v2399_v33 }
 0x2f0   :  { %1419 = vmatpush.msrb.mxu2 %v2398_v46  ;;  %v78_v46 = vadd.f32 %v3506_v12, %v3130_v15 }
 0x2f1   :  { %2383 = vmatmul.msk.f32.gmra.mxu2 %vm163_vm0, %v2375_v17  ;;  %v1232_v17 = vld [vmem:[%s4693_s6 + $0x38] sm:$0xff] }
 0x2f2   :  { %1253 = vmatpush.msra.mxu0 %v1232_v17  ;;  %1420 = vmatpush.msrb.mxu2 %v2397_v59  ;;  %v2393_v17 = vld [vmem:[%s4694_s5 + $0x80] sm:$0xff] }
 0x2f4   :  { %v3636_v19 = vpop.f32.mrf.mxu2  ;;  %1254 = vmatpush.msra.mxu0 %v1231_v27  ;;  %1421 = vmatpush.msrb.mxu2 %v2396_v54  ;;  %v75_v27 = vadd.f32 %v3506_v12, %v3107_v8 }
 0x2f6   :  { %1255 = vmatpush.msra.mxu0 %v1230_v51  ;;  %1422 = vmatpush.msrb.mxu2 %v2395_v18 }
 0x2f8   :  { %1256 = vmatpush.msra.mxu0 %v1229_v47  ;;  %1423 = vmatpush.msrb.mxu2 %v2394_v5  ;;  %v512_v5 = vadd.f32 %v3565_v52, %v3536_v31  ;;  %v2428_v31 = vld [vmem:[%s4694_s5 + $0x158] sm:$0xff] }
 0x2f9   :  { %2384 = vmatmul.msk.f32.gmra.mxu2 %vm163_vm0, %v2376_v29  ;;  %v1293_v29 = vld [vmem:[%s4694_s5 + $0x38] sm:$0xff] }
 0x2fa   :  { %1310 = vmatpush.msrb.mxu1 %v1293_v29  ;;  %1257 = vmatpush.msra.mxu0 %v1228_v53  ;;  %v3808_v29 = vpop.f32.mrf.mxu1  ;;  %v2452_v52 = vld [vmem:[%s4694_s5 + $0x1d8] sm:$0xff] }
 0x2fb   :  { %1424 = vmatpush.msrb.mxu2 %v2393_v17 }
 0x2fc   :  { %v3644_v34 = vpop.f32.mrf.mxu2  ;;  %1311 = vmatpush.msrb.mxu1 %v1292_v48  ;;  %1258 = vmatpush.msra.mxu0 %v1227_v55  ;;  %v229_v48 = vadd.f32 %v3465_v0, %v75_v27  ;;  %v2453_v27 = vld [vmem:[%s4694_s5 + $0x1e0] sm:$0xff] }
 0x2fe   :  { %1312 = vmatpush.msrb.mxu1 %v1291_v45  ;;  %1259 = vmatpush.msra.mxu0 %v1226_v1  ;;  %v369_v51 = vadd.f32 %v3491_v7, %v229_v48  ;;  %v2430_v1 = vld [vmem:[%s4694_s5 + $0x168] sm:$0xff]  ;;  %v652_v48 = vadd.f32 %v3614_v6, %v512_v5  ;;  %v2427_v6 = vld [vmem:[%s4694_s5 + $0x150] sm:$0xff]  ;;  %v2417_v5 = vld [vmem:[%s4694_s5 + $0x100] sm:$0xff] }
 0x300   :  { %1313 = vmatpush.msrb.mxu1 %v1290_v49  ;;  %1260 = vmatpush.msra.mxu0 %v1225_v9  ;;  %v509_v47 = vadd.f32 %v3517_v28, %v369_v51  ;;  %v230_v49 = vadd.f32 %v3478_v4, %v78_v46  ;;  %v2451_v51 = vld [vmem:[%s4694_s5 + $0x1d0] sm:$0xff]  ;;  %v792_v46 = vadd.f32 %v3646_v23, %v652_v48  ;;  %v2450_v23 = vld [vmem:[%s4694_s5 + $0x1c8] sm:$0xff] }
 0x301   :  { %v516_v48 = vadd.f32 %v3611_v36, %v3582_v58 }
 0x302   :  { %1314 = vmatpush.msrb.mxu1 %v1289_v41  ;;  %v1045_v33 = vpop.f32.mrf.mxu1  ;;  %v649_v59 = vadd.f32 %v3592_v24, %v509_v47  ;;  %v370_v53 = vadd.f32 %v3501_v11, %v230_v49  ;;  %v511_v11 = vadd.f32 %v3551_v44, %v3521_v21  ;;  %v2456_v21 = vld [vmem:[%s4694_s5 + $0x1f8] sm:$0xff]  ;;  %v2426_v49 = vld [vmem:[%s4694_s5 + $0x148] sm:$0xff] }
 0x303   :  { %1623 = vmatpush.msra.mxu2 %v2456_v21 }
 0x304   :  { %v3648_v25 = vpop.f32.mrf.mxu2  ;;  %1315 = vmatpush.msrb.mxu1 %v1288_v56  ;;  %v789_v0 = vadd.f32 %v3620_v16, %v649_v59  ;;  %v510_v7 = vadd.f32 %v3534_v26, %v370_v53  ;;  %v651_v16 = vadd.f32 %v3606_v3, %v511_v11  ;;  %v2432_v26 = vld [vmem:[%s4694_s5 + $0x178] sm:$0xff]  ;;  %v2431_v3 = vld [vmem:[%s4694_s5 + $0x170] sm:$0xff]  ;;  %v513_v59 = vadd.f32 %v3579_v42, %v3549_v39  ;;  %v2449_v42 = vld [vmem:[%s4694_s5 + $0x1c0] sm:$0xff] }
 0x306   :  { %1316 = vmatpush.msrb.mxu1 %v1287_v30  ;;  %v929_v54 = vadd.f32 %v3648_v25, %v789_v0  ;;  %v650_v55 = vadd.f32 %v3598_v62, %v510_v7  ;;  %v791_v25 = vadd.f32 %v3638_v20, %v651_v16  ;;  %v2454_v30 = vld [vmem:[%s4694_s5 + $0x1e8] sm:$0xff]  ;;  %v2429_v20 = vld [vmem:[%s4694_s5 + $0x160] sm:$0xff]  ;;  %v653_v7 = vadd.f32 %v3622_v10, %v513_v59  ;;  %v2448_v10 = vld [vmem:[%s4694_s5 + $0x1b8] sm:$0xff] }
 0x307   :  { %v2425_v0 = vld [vmem:[%s4694_s5 + $0x140] sm:$0xff] }
 0x308   :  { %1317 = vmatpush.msrb.mxu1 %v1286_v22  ;;  %v1069_v15 = vadd.f32 %v1045_v33, %v929_v54  ;;  %v790_v28 = vadd.f32 %v3628_v13, %v650_v55  ;;  %v2455_v13 = vld [vmem:[%s4694_s5 + $0x1f0] sm:$0xff]  ;;  %v2421_v16 = vld [vmem:[%s4694_s5 + $0x120] sm:$0xff] }
 0x309   :  { %1624 = vmatpush.msra.mxu2 %v2455_v13 }
 0x30a   :  { %v1048_v41 = vpop.f32.mrf.mxu1  ;;  %1516 = vmatpush.msra.mxu1 %v2432_v26 }
 0x30b   :  { %1625 = vmatpush.msra.mxu2 %v2454_v30 }
 0x30c   :  { %v3670_v38 = vpop.f32.mrf.mxu2  ;;  %1517 = vmatpush.msra.mxu1 %v2431_v3 }
 0x30d   :  { %v930_v24 = vadd.f32 %v3670_v38, %v790_v28  ;;  %1626 = vmatpush.msra.mxu2 %v2453_v27 }
 0x30e   :  { %1518 = vmatpush.msra.mxu1 %v2430_v1 }
 0x30f   :  { %v1070_v44 = vadd.f32 %v1048_v41, %v930_v24  ;;  %1627 = vmatpush.msra.mxu2 %v2452_v52 }
 0x310   :  { %1519 = vmatpush.msra.mxu1 %v2429_v20  ;;  %v2442_v20 = vld [vmem:[%s4694_s5 + $0x188] sm:$0xff] }
 0x311   :  { %1628 = vmatpush.msra.mxu2 %v2451_v51 }
 0x312   :  { %v1051_v56 = vpop.f32.mrf.mxu1  ;;  %1520 = vmatpush.msra.mxu1 %v2428_v31 }
 0x313   :  { %1629 = vmatpush.msra.mxu2 %v2450_v23  ;;  %v2478_v23 = vld [vmem:[%s4694_s5 + $0x268] sm:$0xff] }
 0x314   :  { %v3710_v57 = vpop.f32.mrf.mxu2  ;;  %1521 = vmatpush.msra.mxu1 %v2427_v6 }
 0x315   :  { %v931_v9 = vadd.f32 %v3710_v57, %v791_v25  ;;  %1630 = vmatpush.msra.mxu2 %v2449_v42  ;;  %v2418_v25 = vld [vmem:[%s4694_s5 + $0x108] sm:$0xff]  ;;  %v2477_v42 = vld [vmem:[%s4694_s5 + $0x260] sm:$0xff] }
 0x316   :  { %1522 = vmatpush.msra.mxu1 %v2426_v49 }
 0x317   :  { %v1071_v57 = vadd.f32 %v1051_v56, %v931_v9  ;;  %v514_v56 = vadd.f32 %v3590_v43, %v3560_v50  ;;  %1631 = vmatpush.msra.mxu2 %v2448_v10  ;;  %v2446_v50 = vld [vmem:[%s4694_s5 + $0x1a8] sm:$0xff]  ;;  %v2420_v43 = vld [vmem:[%s4694_s5 + $0x118] sm:$0xff]  ;;  %v2499_v10 = vld [vmem:[%s4694_s5 + $0x2d0] sm:$0xff] }
 0x318   :  { %1523 = vmatpush.msra.mxu1 %v2425_v0  ;;  %v2503_v0 = vld [vmem:[%s4694_s5 + $0x2f0] sm:$0xff] }
 0x319   :  { %v654_v26 = vadd.f32 %v3630_v14, %v514_v56  ;;  %v2419_v14 = vld [vmem:[%s4694_s5 + $0x110] sm:$0xff]  ;;  %v2472_v56 = vld [vmem:[%s4694_s5 + $0x238] sm:$0xff] }
 0x31a   :  { %v1054_v17 = vpop.f32.mrf.mxu1 }
 0x31b   :  { %v794_v3 = vadd.f32 %v3708_v63, %v654_v26  ;;  %v2444_v63 = vld [vmem:[%s4694_s5 + $0x198] sm:$0xff]  ;;  %v2494_v26 = vld [vmem:[%s4694_s5 + $0x2a8] sm:$0xff] }
 0x31c   :  { %v3748_v35 = vpop.f32.mrf.mxu2 }
 0x31d   :  { %v932_v53 = vadd.f32 %v3748_v35, %v792_v46  ;;  %v2424_v35 = vld [vmem:[%s4694_s5 + $0x138] sm:$0xff] }
 0x31e   :  { %1524 = vmatpush.msra.mxu1 %v2424_v35  ;;  %v2476_v35 = vld [vmem:[%s4694_s5 + $0x258] sm:$0xff] }
 0x31f   :  { %v1072_v54 = vadd.f32 %v1054_v17, %v932_v53  ;;  %v2479_v53 = vld [vmem:[%s4694_s5 + $0x270] sm:$0xff] }
 0x322   :  { %v1057_v39 = vpop.f32.mrf.mxu1 }
 0x324   :  { %v3788_v60 = vpop.f32.mrf.mxu2 }
 0x32a   :  { %v1060_v21 = vpop.f32.mrf.mxu1 }
 0x32c   :  { %v3810_v37 = vpop.f32.mrf.mxu2 }
 0x32d   :  { %v934_v1 = vadd.f32 %v3810_v37, %v794_v3  ;;  %v2466_v3 = vld [vmem:[%s4694_s5 + $0x208] sm:$0xff] }
 0x332   :  { %v1063_v27 = vpop.f32.mrf.mxu1 }
 0x334   :  { %v3816_v45 = vpop.f32.mrf.mxu2 }
 0x33a   :  { %v1066_v46 = vpop.f32.mrf.mxu1 }
 0x33c   :  { %v3824_v8 = vpop.f32.mrf.mxu2 }
 0x344   :  { %v1185_v12 = vpop.f32.mrf.mxu2 }
 0x345   :  { %v1209_v4 = vadd.f32 %v1185_v12, %v1069_v15  ;;  %v2423_v15 = vld [vmem:[%s4694_s5 + $0x130] sm:$0xff]  ;;  %v793_v12 = vadd.f32 %v3659_v32, %v653_v7  ;;  %v2502_v7 = vld [vmem:[%s4694_s5 + $0x2e8] sm:$0xff] }
 0x346   :  { %1525 = vmatpush.msra.mxu1 %v2423_v15  ;;  %v2447_v32 = vld [vmem:[%s4694_s5 + $0x1b0] sm:$0xff]  ;;  %v2498_v15 = vld [vmem:[%s4694_s5 + $0x2c8] sm:$0xff] }
 0x347   :  { %v3834_v18 = vmax.f32 %v1209_v4, 0.0  ;;  %v2422_v4 = vld [vmem:[%s4694_s5 + $0x128] sm:$0xff]  ;;  %v933_v11 = vadd.f32 %v3788_v60, %v793_v12  ;;  %1632 = vmatpush.msra.mxu2 %v2447_v32  ;;  %v2495_v32 = vld [vmem:[%s4694_s5 + $0x2b0] sm:$0xff] }
 0x348   :  { %1526 = vmatpush.msra.mxu1 %v2422_v4  ;;  %v2474_v12 = vld [vmem:[%s4694_s5 + $0x248] sm:$0xff]  ;;  %v2473_v4 = vld [vmem:[%s4694_s5 + $0x240] sm:$0xff] }
 0x349   :  { %1261 = vmatmul.f32.vlgmr.msra.gmra.mxu0 %v3834_v18  ;;  %1318 = vmatmul.f32.vlgmr.msrb.gmra.mxu1 %v3834_v18  ;;  %v1073_v60 = vadd.f32 %v1057_v39, %v933_v11  ;;  %v2501_v39 = vld [vmem:[%s4694_s5 + $0x2e0] sm:$0xff]  ;;  %v2496_v11 = vld [vmem:[%s4694_s5 + $0x2b8] sm:$0xff] }
 0x34a   :  { %1425 = vmatmul.f32.vlgmr.msrb.gmra.mxu2 %v3834_v18  ;;  %1527 = vmatpush.msra.mxu1 %v2421_v16  ;;  %v2471_v16 = vld [vmem:[%s4694_s5 + $0x230] sm:$0xff] }
 0x34b   :  { %1633 = vmatpush.msra.mxu2 %v2446_v50  ;;  %v2470_v50 = vld [vmem:[%s4694_s5 + $0x228] sm:$0xff] }
 0x34c   :  { %v1188_v62 = vpop.f32.mrf.mxu2  ;;  %1528 = vmatpush.msra.mxu1 %v2420_v43  ;;  %v2493_v43 = vld [vmem:[%s4694_s5 + $0x2a0] sm:$0xff] }
 0x34d   :  { %v1210_v38 = vadd.f32 %v1188_v62, %v1070_v44  ;;  %v2445_v62 = vld [vmem:[%s4694_s5 + $0x1a0] sm:$0xff] }
 0x34e   :  { %1529 = vmatpush.msra.mxu1 %v2419_v14  ;;  %1634 = vmatpush.msra.mxu2 %v2445_v62  ;;  %v2468_v14 = vld [vmem:[%s4694_s5 + $0x218] sm:$0xff]  ;;  %v2491_v62 = vld [vmem:[%s4694_s5 + $0x290] sm:$0xff] }
 0x34f   :  { %v3862_v22 = vmax.f32 %v1210_v38, 0.0  ;;  %v515_v38 = vadd.f32 %v3600_v2, %v3571_v61  ;;  %v2443_v61 = vld [vmem:[%s4694_s5 + $0x190] sm:$0xff]  ;;  %v1074_v2 = vadd.f32 %v1060_v21, %v934_v1  ;;  %v2492_v21 = vld [vmem:[%s4694_s5 + $0x298] sm:$0xff] }
 0x350   :  { %1530 = vmatpush.msra.mxu1 %v2418_v25  ;;  %1635 = vmatpush.msra.mxu2 %v2444_v63  ;;  %v2465_v25 = vld [vmem:[%s4694_s5 + $0x200] sm:$0xff]  ;;  %v2552_v63 = vld [vmem:[%s4694_s5 + $0x3f8] sm:$0xff] }
 0x351   :  { %1264 = vmatmul.f32.gmra.mxu0 %v3862_v22  ;;  %1321 = vmatmul.f32.gmra.mxu1 %v3862_v22  ;;  %v655_v9 = vadd.f32 %v3636_v19, %v515_v38  ;;  %v2489_v38 = vld [vmem:[%s4694_s5 + $0x280] sm:$0xff] }
 0x352   :  { %1428 = vmatmul.f32.gmra.mxu2 %v3862_v22  ;;  %1531 = vmatpush.msra.mxu1 %v2417_v5  ;;  %v2528_v5 = vld [vmem:[%s4694_s5 + $0x378] sm:$0xff] }
 0x353   :  { %v795_v19 = vadd.f32 %v3759_v40, %v655_v9  ;;  %1636 = vmatpush.msra.mxu2 %v2443_v61  ;;  %v2527_v9 = vld [vmem:[%s4694_s5 + $0x370] sm:$0xff] }
 0x354   :  { %v1191_v33 = vpop.f32.mrf.mxu2  ;;  %v2551_v61 = vld [vmem:[%s4694_s5 + $0x3f0] sm:$0xff] }
 0x355   :  { %v1211_v47 = vadd.f32 %v1191_v33, %v1071_v57  ;;  %v935_v31 = vadd.f32 %v3816_v45, %v795_v19  ;;  %1637 = vmatpush.msra.mxu2 %v2442_v20  ;;  %v2441_v57 = vld [vmem:[%s4694_s5 + $0x180] sm:$0xff]  ;;  %v656_v33 = vadd.f32 %v3644_v34, %v516_v48  ;;  %v2526_v20 = vld [vmem:[%s4694_s5 + $0x368] sm:$0xff]  ;;  %v2524_v48 = vld [vmem:[%s4694_s5 + $0x358] sm:$0xff] }
 0x356   :  { %v2550_v19 = vld [vmem:[%s4694_s5 + $0x3e8] sm:$0xff] }
 0x357   :  { %v3893_v41 = vmax.f32 %v1211_v47, 0.0  ;;  %v1075_v40 = vadd.f32 %v1063_v27, %v935_v31  ;;  %1638 = vmatpush.msra.mxu2 %v2441_v57  ;;  %v796_v36 = vadd.f32 %v3808_v29, %v656_v33  ;;  %v2480_v29 = vld [vmem:[%s4694_s5 + $0x278] sm:$0xff]  ;;  %v2549_v27 = vld [vmem:[%s4694_s5 + $0x3e0] sm:$0xff]  ;;  %v2523_v57 = vld [vmem:[%s4694_s5 + $0x350] sm:$0xff] }
 0x358   :  { %1730 = vmatpush.msrb.mxu1 %v2480_v29  ;;  %v2548_v31 = vld [vmem:[%s4694_s5 + $0x3d8] sm:$0xff]  ;;  %v2547_v33 = vld [vmem:[%s4694_s5 + $0x3d0] sm:$0xff] }
 0x359   :  { %1267 = vmatmul.f32.gmra.mxu0 %v3893_v41  ;;  %1324 = vmatmul.f32.gmra.mxu1 %v3893_v41  ;;  %v936_v6 = vadd.f32 %v3824_v8, %v796_v36  ;;  %v2504_v8 = vld [vmem:[%s4694_s5 + $0x2f8] sm:$0xff]  ;;  %v2522_v36 = vld [vmem:[%s4694_s5 + $0x348] sm:$0xff]  ;;  %v2543_v29 = vld [vmem:[%s4694_s5 + $0x3b0] sm:$0xff] }
 0x35a   :  { %1431 = vmatmul.f32.gmra.mxu2 %v3893_v41  ;;  %1731 = vmatpush.msrb.mxu1 %v2479_v53 }
 0x35b   :  { %v1076_v34 = vadd.f32 %v1066_v46, %v936_v6  ;;  %1837 = vmatpush.msrb.mxu2 %v2504_v8  ;;  %v2521_v6 = vld [vmem:[%s4694_s5 + $0x340] sm:$0xff] }
 0x35c   :  { %v1194_v55 = vpop.f32.mrf.mxu2  ;;  %1732 = vmatpush.msrb.mxu1 %v2478_v23  ;;  %v2545_v46 = vld [vmem:[%s4694_s5 + $0x3c0] sm:$0xff]  ;;  %v2542_v23 = vld [vmem:[%s4694_s5 + $0x3a8] sm:$0xff] }
 0x35d   :  { %v1212_v28 = vadd.f32 %v1194_v55, %v1072_v54  ;;  %1838 = vmatpush.msrb.mxu2 %v2503_v0  ;;  %v2500_v54 = vld [vmem:[%s4694_s5 + $0x2d8] sm:$0xff]  ;;  %v2475_v55 = vld [vmem:[%s4694_s5 + $0x250] sm:$0xff]  ;;  %v2518_v0 = vld [vmem:[%s4694_s5 + $0x328] sm:$0xff] }
 0x35e   :  { %1733 = vmatpush.msrb.mxu1 %v2477_v42  ;;  %v2516_v42 = vld [vmem:[%s4694_s5 + $0x318] sm:$0xff] }
 0x35f   :  { %v3924_v24 = vmax.f32 %v1212_v28, 0.0  ;;  %1839 = vmatpush.msrb.mxu2 %v2502_v7  ;;  %v2497_v28 = vld [vmem:[%s4694_s5 + $0x2c0] sm:$0xff] }
 0x360   :  { %1734 = vmatpush.msrb.mxu1 %v2476_v35  ;;  %v2517_v7 = vld [vmem:[%s4694_s5 + $0x320] sm:$0xff]  ;;  %v2540_v35 = vld [vmem:[%s4694_s5 + $0x398] sm:$0xff] }
 0x361   :  { %1270 = vmatmul.f32.gmra.mxu0 %v3924_v24  ;;  %1327 = vmatmul.f32.gmra.mxu1 %v3924_v24 }
 0x362   :  { %1434 = vmatmul.f32.gmra.mxu2 %v3924_v24  ;;  %1735 = vmatpush.msrb.mxu1 %v2475_v55  ;;  %v2539_v55 = vld [vmem:[%s4694_s5 + $0x390] sm:$0xff] }
 0x363   :  { %1840 = vmatpush.msrb.mxu2 %v2501_v39  ;;  %v2541_v39 = vld [vmem:[%s4694_s5 + $0x3a0] sm:$0xff] }
 0x364   :  { %v1197_v44 = vpop.f32.mrf.mxu2  ;;  %1736 = vmatpush.msrb.mxu1 %v2474_v12  ;;  %v2514_v12 = vld [vmem:[%s4694_s5 + $0x308] sm:$0xff] }
 0x365   :  { %v1213_v13 = vadd.f32 %v1197_v44, %v1073_v60  ;;  %1841 = vmatpush.msrb.mxu2 %v2500_v54  ;;  %v2469_v60 = vld [vmem:[%s4694_s5 + $0x220] sm:$0xff]  ;;  %v2467_v44 = vld [vmem:[%s4694_s5 + $0x210] sm:$0xff] }
 0x366   :  { %1737 = vmatpush.msrb.mxu1 %v2473_v4  ;;  %v2515_v54 = vld [vmem:[%s4694_s5 + $0x310] sm:$0xff]  ;;  %v2513_v4 = vld [vmem:[%s4694_s5 + $0x300] sm:$0xff] }
 0x367   :  { %v3955_v30 = vmax.f32 %v1213_v13, 0.0  ;;  %1842 = vmatpush.msrb.mxu2 %v2499_v10  ;;  %v2490_v13 = vld [vmem:[%s4694_s5 + $0x288] sm:$0xff] }
 0x368   :  { %1738 = vmatpush.msrb.mxu1 %v2472_v56  ;;  %v2537_v56 = vld [vmem:[%s4694_s5 + $0x380] sm:$0xff] }
 0x369   :  { %1273 = vmatmul.f32.gmra.mxu0 %v3955_v30  ;;  %1330 = vmatmul.f32.gmra.mxu1 %v3955_v30 }
 0x36a   :  { %1437 = vmatmul.f32.gmra.mxu2 %v3955_v30  ;;  %1739 = vmatpush.msrb.mxu1 %v2471_v16 }
 0x36b   :  { %1843 = vmatpush.msrb.mxu2 %v2498_v15 }
 0x36c   :  { %v1200_v37 = vpop.f32.mrf.mxu2  ;;  %1740 = vmatpush.msrb.mxu1 %v2470_v50 }
 0x36d   :  { %v1214_v17 = vadd.f32 %v1200_v37, %v1074_v2  ;;  %1844 = vmatpush.msrb.mxu2 %v2497_v28  ;;  %v2538_v28 = vld [vmem:[%s4694_s5 + $0x388] sm:$0xff] }
 0x36e   :  { %1741 = vmatpush.msrb.mxu1 %v2469_v60 }
 0x36f   :  { %v3977_v52 = vmax.f32 %v1214_v17, 0.0  ;;  %1845 = vmatpush.msrb.mxu2 %v2496_v11  ;;  %v2525_v17 = vld [vmem:[%s4694_s5 + $0x360] sm:$0xff] }
 0x370   :  { %1742 = vmatpush.msrb.mxu1 %v2468_v14 }
 0x371   :  { %1276 = vmatmul.f32.gmra.mxu0 %v3977_v52  ;;  %1333 = vmatmul.f32.gmra.mxu1 %v3977_v52 }
 0x372   :  { %1440 = vmatmul.f32.gmra.mxu2 %v3977_v52  ;;  %1743 = vmatpush.msrb.mxu1 %v2467_v44  ;;  %v2595_v44 = vld [vmem:[%s4692_s0] sm:$0xff] }
 0x373   :  { %1846 = vmatpush.msrb.mxu2 %v2495_v32 }
 0x374   :  { %v1203_v58 = vpop.f32.mrf.mxu2  ;;  %1744 = vmatpush.msrb.mxu1 %v2466_v3  ;;  %v2596_v3 = vld [vmem:[%s4692_s0 + $0x40] sm:$0xff] }
 0x375   :  { %v1215_v45 = vadd.f32 %v1203_v58, %v1075_v40  ;;  %1847 = vmatpush.msrb.mxu2 %v2494_v26 }
 0x376   :  { %1745 = vmatpush.msrb.mxu1 %v2465_v25 }
 0x377   :  { %v3988_v51 = vmax.f32 %v1215_v45, 0.0  ;;  %1848 = vmatpush.msrb.mxu2 %v2493_v43  ;;  %v2546_v45 = vld [vmem:[%s4694_s5 + $0x3c8] sm:$0xff] }
 0x379   :  { %1279 = vmatmul.f32.gmra.mxu0 %v3988_v51  ;;  %1336 = vmatmul.f32.gmra.mxu1 %v3988_v51 }
 0x37a   :  { %1443 = vmatmul.f32.gmra.mxu2 %v3988_v51 }
 0x37b   :  { %1849 = vmatpush.msrb.mxu2 %v2492_v21 }
 0x37c   :  { %v1206_v47 = vpop.f32.mrf.mxu2 }
 0x37d   :  { %v1216_v49 = vadd.f32 %v1206_v47, %v1076_v34  ;;  %1850 = vmatpush.msrb.mxu2 %v2491_v62  ;;  %v2520_v34 = vld [vmem:[%s4694_s5 + $0x338] sm:$0xff] }
 0x37e   :  { %v2544_v47 = vld [vmem:[%s4694_s5 + $0x3b8] sm:$0xff] }
 0x37f   :  { %v3993_v59 = vmax.f32 %v1216_v49, 0.0  ;;  %1851 = vmatpush.msrb.mxu2 %v2490_v13  ;;  %v2519_v49 = vld [vmem:[%s4694_s5 + $0x330] sm:$0xff]  ;;  %v2597_v13 = vld [vmem:[%s4692_s0 + $0x8] sm:$0xff] }
 0x381   :  { %1282 = vmatmul.f32.gmra.mxu0 %v3993_v59  ;;  %1339 = vmatmul.f32.gmra.mxu1 %v3993_v59 }
 0x382   :  { %1446 = vmatmul.f32.gmra.mxu2 %v3993_v59 }
 0x383   :  { %1852 = vmatpush.msrb.mxu2 %v2489_v38  ;;  %v2598_v38 = vld [vmem:[%s4692_s0 + $0x48] sm:$0xff] }
 0x389   :  { %1532 = vmatmul.f32.vlgmr.msra.gmra.mxu1 %v3834_v18 }
 0x38a   :  { %1639 = vmatmul.f32.vlgmr.msra.gmra.mxu2 %v3834_v18  ;;  %1944 = vmatpush.msra.mxu1 %v2528_v5 }
 0x38b   :  { %2051 = vmatpush.msra.mxu2 %v2552_v63  ;;  %v2600_v63 = vld [vmem:[%s4692_s0 + $0x50] sm:$0xff] }
 0x38c   :  { %1945 = vmatpush.msra.mxu1 %v2527_v9  ;;  %v2601_v9 = vld [vmem:[%s4692_s0 + $0x18] sm:$0xff] }
 0x38d   :  { %2052 = vmatpush.msra.mxu2 %v2551_v61 }
 0x38e   :  { %1946 = vmatpush.msra.mxu1 %v2526_v20 }
 0x38f   :  { %2053 = vmatpush.msra.mxu2 %v2550_v19 }
 0x390   :  { %1947 = vmatpush.msra.mxu1 %v2525_v17  ;;  %v2605_v17 = vld [vmem:[%s4692_s0 + $0x28] sm:$0xff] }
 0x391   :  { %1535 = vmatmul.f32.gmra.mxu1 %v3862_v22  ;;  %2054 = vmatpush.msra.mxu2 %v2549_v27 }
 0x392   :  { %1642 = vmatmul.f32.gmra.mxu2 %v3862_v22  ;;  %1948 = vmatpush.msra.mxu1 %v2524_v48 }
 0x393   :  { %2055 = vmatpush.msra.mxu2 %v2548_v31  ;;  %v2607_v31 = vld [vmem:[%s4692_s0 + $0x30] sm:$0xff] }
 0x394   :  { %1949 = vmatpush.msra.mxu1 %v2523_v57 }
 0x395   :  { %2056 = vmatpush.msra.mxu2 %v2547_v33 }
 0x396   :  { %1950 = vmatpush.msra.mxu1 %v2522_v36 }
 0x397   :  { %2057 = vmatpush.msra.mxu2 %v2546_v45  ;;  %v2610_v45 = vld [vmem:[%s4692_s0 + $0x78] sm:$0xff] }
 0x398   :  { %1951 = vmatpush.msra.mxu1 %v2521_v6 }
 0x399   :  { %1538 = vmatmul.f32.gmra.mxu1 %v3893_v41  ;;  %2058 = vmatpush.msra.mxu2 %v2545_v46  ;;  %v2611_v46 = vld [vmem:[%s4692_s0 + $0x80] sm:$0xff] }
 0x39a   :  { %1645 = vmatmul.f32.gmra.mxu2 %v3893_v41  ;;  %1952 = vmatpush.msra.mxu1 %v2520_v34 }
 0x39b   :  { %2059 = vmatpush.msra.mxu2 %v2544_v47 }
 0x39c   :  { %1953 = vmatpush.msra.mxu1 %v2519_v49  ;;  %v2612_v49 = vld [vmem:[%s4692_s0 + $0xc0] sm:$0xff] }
 0x39d   :  { %2060 = vmatpush.msra.mxu2 %v2543_v29  ;;  %v2613_v29 = vld [vmem:[%s4692_s0 + $0x88] sm:$0xff] }
 0x39e   :  { %1954 = vmatpush.msra.mxu1 %v2518_v0 }
 0x39f   :  { %2061 = vmatpush.msra.mxu2 %v2542_v23  ;;  %v2614_v23 = vld [vmem:[%s4692_s0 + $0xc8] sm:$0xff] }
 0x3a0   :  { %1955 = vmatpush.msra.mxu1 %v2517_v7  ;;  %v2615_v7 = vld [vmem:[%s4692_s0 + $0x90] sm:$0xff] }
 0x3a1   :  { %1541 = vmatmul.f32.gmra.mxu1 %v3924_v24  ;;  %2062 = vmatpush.msra.mxu2 %v2541_v39 }
 0x3a2   :  { %1648 = vmatmul.f32.gmra.mxu2 %v3924_v24  ;;  %1956 = vmatpush.msra.mxu1 %v2516_v42 }
 0x3a3   :  { %2063 = vmatpush.msra.mxu2 %v2540_v35 }
 0x3a4   :  { %1957 = vmatpush.msra.mxu1 %v2515_v54  ;;  %v2616_v54 = vld [vmem:[%s4692_s0 + $0xd0] sm:$0xff] }
 0x3a5   :  { %2064 = vmatpush.msra.mxu2 %v2539_v55  ;;  %v2617_v55 = vld [vmem:[%s4692_s0 + $0x98] sm:$0xff] }
 0x3a6   :  { %1958 = vmatpush.msra.mxu1 %v2514_v12 }
 0x3a7   :  { %2065 = vmatpush.msra.mxu2 %v2538_v28  ;;  %v2618_v28 = vld [vmem:[%s4692_s0 + $0xd8] sm:$0xff] }
 0x3a8   :  { %1959 = vmatpush.msra.mxu1 %v2513_v4  ;;  %v2619_v4 = vld [vmem:[%s4692_s0 + $0xa0] sm:$0xff] }
 0x3a9   :  { %1544 = vmatmul.f32.gmra.mxu1 %v3955_v30  ;;  %2066 = vmatpush.msra.mxu2 %v2537_v56 }
 0x3aa   :  { %1651 = vmatmul.f32.gmra.mxu2 %v3955_v30 }
 0x3b1   :  { %1547 = vmatmul.f32.gmra.mxu1 %v3977_v52 }
 0x3b2   :  { %1654 = vmatmul.f32.gmra.mxu2 %v3977_v52 }
 0x3b9   :  { %1550 = vmatmul.f32.gmra.mxu1 %v3988_v51 }
 0x3ba   :  { %1657 = vmatmul.f32.gmra.mxu2 %v3988_v51 }
 0x3c1   :  { %1553 = vmatmul.f32.gmra.mxu1 %v3993_v59 }
 0x3c2   :  { %1660 = vmatmul.f32.gmra.mxu2 %v3993_v59 }
 0x3c6   :  { %v4110_v1 = vpop.f32.mrf.mxu1 }
 0x3c9   :  { %1746 = vmatmul.f32.vlgmr.msrb.gmra.mxu1 %v3834_v18 }
 0x3ca   :  { %1853 = vmatmul.f32.vlgmr.msrb.gmra.mxu2 %v3834_v18 }
 0x3cd   :  { %v4126_v2 = vpop.f32.mrf.mxu2 }
 0x3ce   :  { %v4128_v37 = vpop.f32.mrf.mxu1 }
 0x3d1   :  { %1749 = vmatmul.f32.gmra.mxu1 %v3862_v22 }
 0x3d2   :  { %1856 = vmatmul.f32.gmra.mxu2 %v3862_v22 }
 0x3d5   :  { %v4156_v40 = vpop.f32.mrf.mxu2 }
 0x3d6   :  { %v4158_v58 = vpop.f32.mrf.mxu1 }
 0x3d9   :  { %1752 = vmatmul.f32.gmra.mxu1 %v3893_v41 }
 0x3da   :  { %1859 = vmatmul.f32.gmra.mxu2 %v3893_v41 }
 0x3dd   :  { %v4186_v8 = vpop.f32.mrf.mxu2 }
 0x3de   :  { %v1328_v53 = vpop.f32.mrf.mxu1 }
 0x3e1   :  { %1755 = vmatmul.f32.gmra.mxu1 %v3924_v24 }
 0x3e2   :  { %1862 = vmatmul.f32.gmra.mxu2 %v3924_v24 }
 0x3e5   :  { %v1435_v10 = vpop.f32.mrf.mxu2 }
 0x3e6   :  { %v1331_v15 = vpop.f32.mrf.mxu1 }
 0x3e9   :  { %1758 = vmatmul.f32.gmra.mxu1 %v3955_v30 }
 0x3ea   :  { %1865 = vmatmul.f32.gmra.mxu2 %v3955_v30 }
 0x3ed   :  { %v1438_v11 = vpop.f32.mrf.mxu2 }
 0x3ee   :  { %v1334_v16 = vpop.f32.mrf.mxu1 }
 0x3f1   :  { %1761 = vmatmul.f32.gmra.mxu1 %v3977_v52 }
 0x3f2   :  { %1868 = vmatmul.f32.gmra.mxu2 %v3977_v52 }
 0x3f5   :  { %v1441_v32 = vpop.f32.mrf.mxu2 }
 0x3f6   :  { %v1337_v26 = vpop.f32.mrf.mxu1 }
 0x3f9   :  { %1764 = vmatmul.f32.gmra.mxu1 %v3988_v51 }
 0x3fa   :  { %1871 = vmatmul.f32.gmra.mxu2 %v3988_v51 }
 0x3fd   :  { %v1444_v50 = vpop.f32.mrf.mxu2 }
 0x3fe   :  { %v1340_v43 = vpop.f32.mrf.mxu1 }
 0x3ff   :  { %1351 = vmatpush.msrb.mxu3 %v1340_v43 }
 0x401   :  { %1352 = vmatpush.msrb.mxu3 %v1337_v26  ;;  %1767 = vmatmul.f32.gmra.mxu1 %v3993_v59  ;;  %v2621_v26 = vld [vmem:[%s4692_s0 + $0xa8] sm:$0xff] }
 0x402   :  { %1874 = vmatmul.f32.gmra.mxu2 %v3993_v59 }
 0x403   :  { %1353 = vmatpush.msrb.mxu3 %v1334_v16  ;;  %v2620_v16 = vld [vmem:[%s4692_s0 + $0xe0] sm:$0xff] }
 0x405   :  { %v1447_v60 = vpop.f32.mrf.mxu2  ;;  %1354 = vmatpush.msrb.mxu3 %v1331_v15 }
 0x406   :  { %1458 = vmatpush.msrb.mxu0 %v1447_v60  ;;  %v4234_v14 = vpop.f32.mrf.mxu1  ;;  %v2622_v60 = vld [vmem:[%s4692_s0 + $0xe8] sm:$0xff] }
 0x407   :  { %1355 = vmatpush.msrb.mxu3 %v1328_v53 }
 0x408   :  { %1459 = vmatpush.msrb.mxu0 %v1444_v50 }
 0x409   :  { %1356 = vmatpush.msrb.mxu3 %v4158_v58  ;;  %1960 = vmatmul.f32.vlgmr.msra.gmra.mxu1 %v3834_v18  ;;  %v2609_v58 = vld [vmem:[%s4692_s0 + $0x38] sm:$0xff] }
 0x40a   :  { %1460 = vmatpush.msrb.mxu0 %v1441_v32  ;;  %2067 = vmatmul.f32.vlgmr.msra.gmra.mxu2 %v3834_v18 }
 0x40b   :  { %1357 = vmatpush.msrb.mxu3 %v4128_v37  ;;  %v2603_v37 = vld [vmem:[%s4692_s0 + $0x20] sm:$0xff] }
 0x40c   :  { %1461 = vmatpush.msrb.mxu0 %v1438_v11 }
 0x40d   :  { %v4240_v21 = vpop.f32.mrf.mxu2  ;;  %1358 = vmatpush.msrb.mxu3 %v4110_v1  ;;  %v2599_v1 = vld [vmem:[%s4692_s0 + $0x10] sm:$0xff] }
 0x40e   :  { %1462 = vmatpush.msrb.mxu0 %v1435_v10  ;;  %2385 = vmatmul.msk.f32.vlgmr.msrb.gmra.mxu3 %vm163_vm0, %v2595_v44  ;;  %v4247_v62 = vpop.f32.mrf.mxu1 }
 0x410   :  { %1463 = vmatpush.msrb.mxu0 %v4186_v8 }
 0x411   :  { %1963 = vmatmul.f32.gmra.mxu1 %v3862_v22 }
 0x412   :  { %1464 = vmatpush.msrb.mxu0 %v4156_v40  ;;  %2070 = vmatmul.f32.gmra.mxu2 %v3862_v22  ;;  %v2608_v40 = vld [vmem:[%s4692_s0 + $0x70] sm:$0xff] }
 0x414   :  { %1465 = vmatpush.msrb.mxu0 %v4126_v2 }
 0x415   :  { %v4254_v18 = vpop.f32.mrf.mxu2  ;;  %2409 = vmatmul.msk.f32.vlgmr.msrb.gmra.mxu0 %vm163_vm0, %v2596_v3  ;;  %v2625_v3 = vld [vmem:[%s4692_s0 + $0xb8] sm:$0xff] }
 0x416   :  { %2386 = vmatmul.msk.f32.gmra.mxu3 %vm163_vm0, %v2597_v13  ;;  %v1539_v25 = vpop.f32.mrf.mxu1 }
 0x419   :  { %1966 = vmatmul.f32.gmra.mxu1 %v3893_v41 }
 0x41a   :  { %2073 = vmatmul.f32.gmra.mxu2 %v3893_v41 }
 0x41d   :  { %v4266_v22 = vpop.f32.mrf.mxu2  ;;  %2410 = vmatmul.msk.f32.gmra.mxu0 %vm163_vm0, %v2598_v38  ;;  %v2626_v38 = vld [vmem:[%s4692_s0 + $0xf8] sm:$0xff] }
 0x41e   :  { %2387 = vmatmul.msk.f32.gmra.mxu3 %vm163_vm0, %v2599_v1  ;;  %v1542_v5 = vpop.f32.mrf.mxu1  ;;  %v2627_v1 = vld [vmem:[%s4692_s0 + $0x100] sm:$0xff] }
 0x421   :  { %1969 = vmatmul.f32.gmra.mxu1 %v3924_v24 }
 0x422   :  { %2076 = vmatmul.f32.gmra.mxu2 %v3924_v24  ;;  %v2602_v24 = vld [vmem:[%s4692_s0 + $0x58] sm:$0xff] }
 0x425   :  { %v1649_v41 = vpop.f32.mrf.mxu2  ;;  %2411 = vmatmul.msk.f32.gmra.mxu0 %vm163_vm0, %v2600_v63 }
 0x426   :  { %2388 = vmatmul.msk.f32.gmra.mxu3 %vm163_vm0, %v2601_v9  ;;  %v1545_v61 = vpop.f32.mrf.mxu1 }
 0x429   :  { %1972 = vmatmul.f32.gmra.mxu1 %v3955_v30 }
 0x42a   :  { %2079 = vmatmul.f32.gmra.mxu2 %v3955_v30  ;;  %v2604_v30 = vld [vmem:[%s4692_s0 + $0x60] sm:$0xff] }
 0x42d   :  { %v1652_v2 = vpop.f32.mrf.mxu2  ;;  %2412 = vmatmul.msk.f32.gmra.mxu0 %vm163_vm0, %v2602_v24 }
 0x42e   :  { %2389 = vmatmul.msk.f32.gmra.mxu3 %vm163_vm0, %v2603_v37  ;;  %v1548_v20 = vpop.f32.mrf.mxu1 }
 0x431   :  { %1975 = vmatmul.f32.gmra.mxu1 %v3977_v52 }
 0x432   :  { %2082 = vmatmul.f32.gmra.mxu2 %v3977_v52  ;;  %v2606_v52 = vld [vmem:[%s4692_s0 + $0x68] sm:$0xff] }
 0x435   :  { %v1655_v19 = vpop.f32.mrf.mxu2  ;;  %2413 = vmatmul.msk.f32.gmra.mxu0 %vm163_vm0, %v2604_v30  ;;  %v2630_v30 = vld [vmem:[%s4692_s0 + $0x148] sm:$0xff] }
 0x436   :  { %2390 = vmatmul.msk.f32.gmra.mxu3 %vm163_vm0, %v2605_v17  ;;  %v1551_v27 = vpop.f32.mrf.mxu1  ;;  %v2631_v17 = vld [vmem:[%s4692_s0 + $0x110] sm:$0xff] }
 0x439   :  { %1978 = vmatmul.f32.gmra.mxu1 %v3988_v51 }
 0x43a   :  { %2085 = vmatmul.f32.gmra.mxu2 %v3988_v51  ;;  %v4318_v51 = vpop.f32.mrf.mxu0 }
 0x43d   :  { %v1658_v48 = vpop.f32.mrf.mxu2  ;;  %2414 = vmatmul.msk.f32.gmra.mxu0 %vm163_vm0, %v2606_v52 }
 0x43e   :  { %2391 = vmatmul.msk.f32.gmra.mxu3 %vm163_vm0, %v2607_v31  ;;  %v1554_v57 = vpop.f32.mrf.mxu1 }
 0x43f   :  { %1565 = vmatpush.msra.mxu3 %v1554_v57  ;;  %v2632_v57 = vld [vmem:[%s4692_s0 + $0x150] sm:$0xff] }
 0x441   :  { %1566 = vmatpush.msra.mxu3 %v1551_v27  ;;  %1981 = vmatmul.f32.gmra.mxu1 %v3993_v59 }
 0x442   :  { %2088 = vmatmul.f32.gmra.mxu2 %v3993_v59  ;;  %v4338_v6 = vpop.f32.mrf.mxu0 }
 0x443   :  { %1567 = vmatpush.msra.mxu3 %v1548_v20 }
 0x445   :  { %v1661_v33 = vpop.f32.mrf.mxu2  ;;  %1568 = vmatpush.msra.mxu3 %v1545_v61  ;;  %2415 = vmatmul.msk.f32.gmra.mxu0 %vm163_vm0, %v2608_v40  ;;  %v2628_v61 = vld [vmem:[%s4692_s0 + $0x140] sm:$0xff] }
 0x446   :  { %1672 = vmatpush.msra.mxu0 %v1661_v33  ;;  %2392 = vmatmul.msk.f32.gmra.mxu3 %vm163_vm0, %v2609_v58  ;;  %v4328_v36 = vpop.f32.mrf.mxu1  ;;  %v2633_v33 = vld [vmem:[%s4692_s0 + $0x118] sm:$0xff] }
 0x447   :  { %1569 = vmatpush.msra.mxu3 %v1542_v5 }
 0x448   :  { %1673 = vmatpush.msra.mxu0 %v1658_v48 }
 0x449   :  { %1570 = vmatpush.msra.mxu3 %v1539_v25 }
 0x44a   :  { %1674 = vmatpush.msra.mxu0 %v1655_v19  ;;  %v4357_v53 = vpop.f32.mrf.mxu0 }
 0x44b   :  { %1571 = vmatpush.msra.mxu3 %v4247_v62 }
 0x44c   :  { %1675 = vmatpush.msra.mxu0 %v1652_v2  ;;  %v2629_v2 = vld [vmem:[%s4692_s0 + $0x108] sm:$0xff] }
 0x44d   :  { %v4331_v59 = vpop.f32.mrf.mxu2  ;;  %1572 = vmatpush.msra.mxu3 %v4234_v14  ;;  %2416 = vmatmul.msk.f32.gmra.mxu0 %vm163_vm0, %v2610_v45  ;;  %v2623_v14 = vld [vmem:[%s4692_s0 + $0xb0] sm:$0xff]  ;;  %v2634_v45 = vld [vmem:[%s4692_s0 + $0x158] sm:$0xff] }
 0x44e   :  { %1676 = vmatpush.msra.mxu0 %v1649_v41  ;;  %2433 = vmatmul.msk.f32.vlgmr.msra.gmra.mxu3 %vm163_vm0, %v2611_v46  ;;  %v1750_v34 = vpop.f32.mrf.mxu1  ;;  %v2635_v46 = vld [vmem:[%s4692_s0 + $0x120] sm:$0xff] }
 0x450   :  { %1677 = vmatpush.msra.mxu0 %v4266_v22 }
 0x452   :  { %1678 = vmatpush.msra.mxu0 %v4254_v18  ;;  %v4367_v42 = vpop.f32.mrf.mxu0  ;;  %v2624_v18 = vld [vmem:[%s4692_s0 + $0xf0] sm:$0xff] }
 0x454   :  { %1679 = vmatpush.msra.mxu0 %v4240_v21 }
 0x455   :  { %v4347_v47 = vpop.f32.mrf.mxu2  ;;  %2457 = vmatmul.msk.f32.vlgmr.msra.gmra.mxu0 %vm163_vm0, %v2612_v49 }
 0x456   :  { %2434 = vmatmul.msk.f32.gmra.mxu3 %vm163_vm0, %v2613_v29  ;;  %v1753_v8 = vpop.f32.mrf.mxu1 }
 0x45a   :  { %v4377_v15 = vpop.f32.mrf.mxu0 }
 0x45d   :  { %v1860_v0 = vpop.f32.mrf.mxu2  ;;  %2458 = vmatmul.msk.f32.gmra.mxu0 %vm163_vm0, %v2614_v23 }
 0x45e   :  { %2435 = vmatmul.msk.f32.gmra.mxu3 %vm163_vm0, %v2615_v7  ;;  %v1756_v39 = vpop.f32.mrf.mxu1 }
 0x462   :  { %v4391_v32 = vpop.f32.mrf.mxu0 }
 0x465   :  { %v1863_v35 = vpop.f32.mrf.mxu2  ;;  %2459 = vmatmul.msk.f32.gmra.mxu0 %vm163_vm0, %v2616_v54  ;;  %v2638_v54 = vld [vmem:[%s4692_s0 + $0x168] sm:$0xff] }
 0x466   :  { %2436 = vmatmul.msk.f32.gmra.mxu3 %vm163_vm0, %v2617_v55  ;;  %v1759_v10 = vpop.f32.mrf.mxu1  ;;  %v2639_v55 = vld [vmem:[%s4692_s0 + $0x130] sm:$0xff] }
 0x46a   :  { %v4405_v44 = vpop.f32.mrf.mxu0 }
 0x46d   :  { %v1866_v12 = vpop.f32.mrf.mxu2  ;;  %2460 = vmatmul.msk.f32.gmra.mxu0 %vm163_vm0, %v2618_v28 }
 0x46e   :  { %2437 = vmatmul.msk.f32.gmra.mxu3 %vm163_vm0, %v2619_v4  ;;  %v1762_v56 = vpop.f32.mrf.mxu1 }
 0x472   :  { %v4417_v25 = vpop.f32.mrf.mxu0 }
 0x475   :  { %v1869_v11 = vpop.f32.mrf.mxu2  ;;  %2461 = vmatmul.msk.f32.gmra.mxu0 %vm163_vm0, %v2620_v16  ;;  %v2641_v16 = vld [vmem:[%s4692_s0 + $0x138] sm:$0xff] }
 0x476   :  { %2438 = vmatmul.msk.f32.gmra.mxu3 %vm163_vm0, %v2621_v26  ;;  %v1765_v50 = vpop.f32.mrf.mxu1 }
 0x47d   :  { %v1872_v43 = vpop.f32.mrf.mxu2  ;;  %2462 = vmatmul.msk.f32.gmra.mxu0 %vm163_vm0, %v2622_v60 }
 0x47e   :  { %2439 = vmatmul.msk.f32.gmra.mxu3 %vm163_vm0, %v2623_v14  ;;  %v1768_v21 = vpop.f32.mrf.mxu1 }
 0x47f   :  { %1779 = vmatpush.msrb.mxu3 %v1768_v21 }
 0x481   :  { %1780 = vmatpush.msrb.mxu3 %v1765_v50 }
 0x483   :  { %1781 = vmatpush.msrb.mxu3 %v1762_v56  ;;  %v2640_v56 = vld [vmem:[%s4692_s0 + $0x170] sm:$0xff] }
 0x485   :  { %v1875_v62 = vpop.f32.mrf.mxu2  ;;  %1782 = vmatpush.msrb.mxu3 %v1759_v10  ;;  %2463 = vmatmul.msk.f32.gmra.mxu0 %vm163_vm0, %v2624_v18  ;;  %v2642_v18 = vld [vmem:[%s4692_s0 + $0x178] sm:$0xff] }
 0x486   :  { %1886 = vmatpush.msrb.mxu0 %v1875_v62  ;;  %2440 = vmatmul.msk.f32.gmra.mxu3 %vm163_vm0, %v2625_v3  ;;  %v4415_v13 = vpop.f32.mrf.mxu1 }
 0x487   :  { %1783 = vmatpush.msrb.mxu3 %v1756_v39 }
 0x488   :  { %1887 = vmatpush.msrb.mxu0 %v1872_v43 }
 0x489   :  { %1784 = vmatpush.msrb.mxu3 %v1753_v8  ;;  %v2636_v8 = vld [vmem:[%s4692_s0 + $0x160] sm:$0xff] }
 0x48a   :  { %1888 = vmatpush.msrb.mxu0 %v1869_v11  ;;  %v4523_v11 = vld [vmem:[%s4695_s7] ss:$0 sm:$0xff] }
 0x48b   :  { %1785 = vmatpush.msrb.mxu3 %v1750_v34  ;;  %v1284_v26 = vadd.f32 %v4523_v11, %v4417_v25  ;;  %v1263_v43 = vadd.f32 %v4523_v11, %v4318_v51  ;;  %v2643_v51 = vld [vmem:[%s4692_s0 + $0x180] sm:$0xff] }
 0x48c   :  { %1889 = vmatpush.msrb.mxu0 %v1866_v12 }
 0x48d   :  { %v4419_v22 = vpop.f32.mrf.mxu2  ;;  %1786 = vmatpush.msrb.mxu3 %v4328_v36  ;;  %2464 = vmatmul.msk.f32.gmra.mxu0 %vm163_vm0, %v2626_v38 }
 0x48e   :  { %1890 = vmatpush.msrb.mxu0 %v1863_v35  ;;  %2481 = vmatmul.msk.f32.vlgmr.msrb.gmra.mxu3 %vm163_vm0, %v2627_v1  ;;  %v4430_v5 = vpop.f32.mrf.mxu1 }
 0x490   :  { %1891 = vmatpush.msrb.mxu0 %v1860_v0  ;;  %v2637_v0 = vld [vmem:[%s4692_s0 + $0x128] sm:$0xff] }
 0x491   :  { %v4432_v41 = vpop.f32.mrf.mxu3 }
 0x492   :  { %1892 = vmatpush.msrb.mxu0 %v4347_v47  ;;  %v4435_v63 = vpop.f32.mrf.mxu0  ;;  %v1384_v21 = vadd.f32 %v4432_v41, %v1263_v43 }
 0x494   :  { %1893 = vmatpush.msrb.mxu0 %v4331_v59  ;;  %v1491_v3 = vadd.f32 %v4435_v63, %v1384_v21  ;;  %v2644_v63 = vld [vmem:[%s4692_s0 + $0x1c0] sm:$0xff] }
 0x495   :  { %v4438_v9 = vpop.f32.mrf.mxu2  ;;  %2505 = vmatmul.msk.f32.vlgmr.msrb.gmra.mxu0 %vm163_vm0, %v2628_v61 }
 0x496   :  { %2482 = vmatmul.msk.f32.gmra.mxu3 %vm163_vm0, %v2629_v2  ;;  %v1967_v24 = vpop.f32.mrf.mxu1  ;;  %v1269_v2 = vadd.f32 %v4523_v11, %v4357_v53 }
 0x499   :  { %v4448_v37 = vpop.f32.mrf.mxu3 }
 0x49a   :  { %v4450_v20 = vpop.f32.mrf.mxu0 }
 0x49d   :  { %v4452_v19 = vpop.f32.mrf.mxu2  ;;  %2506 = vmatmul.msk.f32.gmra.mxu0 %vm163_vm0, %v2630_v30 }
 0x49e   :  { %2483 = vmatmul.msk.f32.gmra.mxu3 %vm163_vm0, %v2631_v17  ;;  %v1970_v27 = vpop.f32.mrf.mxu1  ;;  %v2647_v17 = vld [vmem:[%s4692_s0 + $0x1c8] sm:$0xff] }
 0x4a1   :  { %v4462_v48 = vpop.f32.mrf.mxu3 }
 0x4a2   :  { %v4464_v52 = vpop.f32.mrf.mxu0 }
 0x4a5   :  { %v4466_v31 = vpop.f32.mrf.mxu2  ;;  %2507 = vmatmul.msk.f32.gmra.mxu0 %vm163_vm0, %v2632_v57 }
 0x4a6   :  { %2484 = vmatmul.msk.f32.gmra.mxu3 %vm163_vm0, %v2633_v33  ;;  %v1973_v40 = vpop.f32.mrf.mxu1 }
 0x4a9   :  { %v4476_v58 = vpop.f32.mrf.mxu3 }
 0x4aa   :  { %v4478_v36 = vpop.f32.mrf.mxu0 }
 0x4ad   :  { %v2080_v59 = vpop.f32.mrf.mxu2  ;;  %2508 = vmatmul.msk.f32.gmra.mxu0 %vm163_vm0, %v2634_v45 }
 0x4ae   :  { %2485 = vmatmul.msk.f32.gmra.mxu3 %vm163_vm0, %v2635_v46  ;;  %v1976_v34 = vpop.f32.mrf.mxu1 }
 0x4b1   :  { %v4488_v47 = vpop.f32.mrf.mxu3 }
 0x4b2   :  { %v4490_v49 = vpop.f32.mrf.mxu0 }
 0x4b5   :  { %v2083_v29 = vpop.f32.mrf.mxu2  ;;  %2509 = vmatmul.msk.f32.gmra.mxu0 %vm163_vm0, %v2636_v8 }
 0x4b6   :  { %2486 = vmatmul.msk.f32.gmra.mxu3 %vm163_vm0, %v2637_v0  ;;  %v1979_v23 = vpop.f32.mrf.mxu1  ;;  %v2651_v0 = vld [vmem:[%s4692_s0 + $0x1d8] sm:$0xff] }
 0x4b9   :  { %v4500_v7 = vpop.f32.mrf.mxu3 }
 0x4ba   :  { %v4502_v39 = vpop.f32.mrf.mxu0 }
 0x4bd   :  { %v2086_v35 = vpop.f32.mrf.mxu2  ;;  %2510 = vmatmul.msk.f32.gmra.mxu0 %vm163_vm0, %v2638_v54 }
 0x4be   :  { %2487 = vmatmul.msk.f32.gmra.mxu3 %vm163_vm0, %v2639_v55  ;;  %v1982_v10 = vpop.f32.mrf.mxu1 }
 0x4bf   :  { %1993 = vmatpush.msra.mxu3 %v1982_v10 }
 0x4c1   :  { %v4512_v12 = vpop.f32.mrf.mxu3  ;;  %1994 = vmatpush.msra.mxu3 %v1979_v23 }
 0x4c2   :  { %v4514_v28 = vpop.f32.mrf.mxu0 }
 0x4c3   :  { %1995 = vmatpush.msra.mxu3 %v1976_v34 }
 0x4c5   :  { %v2089_v4 = vpop.f32.mrf.mxu2  ;;  %1996 = vmatpush.msra.mxu3 %v1973_v40  ;;  %2511 = vmatmul.msk.f32.gmra.mxu0 %vm163_vm0, %v2640_v56 }
 0x4c6   :  { %2100 = vmatpush.msra.mxu0 %v2089_v4  ;;  %2585 = vmatpush.msrb.mxu2 %v2089_v4  ;;  %v2653_v4 = vld [vmem:[%s4692_s0 + $0x1e0] sm:$0xff] }
 0x4c7   :  { %2488 = vmatmul.msk.f32.gmra.mxu3 %vm163_vm0, %v2641_v16 }
 0x4c8   :  { %1997 = vmatpush.msra.mxu3 %v1970_v27  ;;  %2101 = vmatpush.msra.mxu0 %v2086_v35 }
 0x4c9   :  { %2586 = vmatpush.msrb.mxu2 %v2086_v35  ;;  %v1381_v50 = vpop.f32.mrf.mxu3 }
 0x4ca   :  { %v1391_v60 = vadd.f32 %v1381_v50, %v1284_v26  ;;  %1998 = vmatpush.msra.mxu3 %v1967_v24  ;;  %2102 = vmatpush.msra.mxu0 %v2083_v29  ;;  %v1488_v14 = vpop.f32.mrf.mxu0 }
 0x4cb   :  { %2587 = vmatpush.msrb.mxu2 %v2083_v29 }
 0x4cc   :  { %v4534_v62 = vadd.f32 %v1488_v14, %v1391_v60  ;;  %1999 = vmatpush.msra.mxu3 %v4430_v5  ;;  %2103 = vmatpush.msra.mxu0 %v2080_v59  ;;  %v2655_v60 = vld [vmem:[%s4692_s0 + $0x1e8] sm:$0xff] }
 0x4cd   :  { %2588 = vmatpush.msrb.mxu2 %v2080_v59  ;;  %2512 = vmatmul.msk.f32.gmra.mxu0 %vm163_vm0, %v2642_v18  ;;  %v2649_v59 = vld [vmem:[%s4692_s0 + $0x1d0] sm:$0xff] }
 0x4ce   :  { %2000 = vmatpush.msra.mxu3 %v4415_v13  ;;  %2104 = vmatpush.msra.mxu0 %v4466_v31  ;;  %v1266_v13 = vadd.f32 %v4523_v11, %v4338_v6  ;;  %v2645_v6 = vld [vmem:[%s4692_s0 + $0x1f8] sm:$0xff]  ;;  %v2657_v18 = vld [vmem:[%s4692_s0 + $0x1f0] sm:$0xff] }
 0x4cf   :  { %2589 = vmatpush.msrb.mxu2 %v4466_v31  ;;  %2529 = vmatmul.msk.f32.vlgmr.msra.gmra.mxu3 %vm163_vm0, %v2643_v51  ;;  %v2658_v51 = vld [vmem:[%s4692_s0 + $0x1b8] sm:$0xff] }
 0x4d0   :  { %2105 = vmatpush.msra.mxu0 %v4452_v19  ;;  %v1385_v5 = vadd.f32 %v4448_v37, %v1266_v13 }
 0x4d1   :  { %2590 = vmatpush.msrb.mxu2 %v4452_v19  ;;  %v1574_v25 = vpop.f32.mrf.mxu3  ;;  %v1386_v19 = vadd.f32 %v4462_v48, %v1269_v2  ;;  %v1272_v48 = vadd.f32 %v4523_v11, %v4367_v42 }
 0x4d2   :  { %v1598_v38 = vadd.f32 %v1574_v25, %v1491_v3  ;;  %2106 = vmatpush.msra.mxu0 %v4438_v9  ;;  %v1681_v1 = vpop.f32.mrf.mxu0 }
 0x4d3   :  { %2591 = vmatpush.msrb.mxu2 %v4438_v9  ;;  %v2646_v9 = vld [vmem:[%s4692_s0 + $0x188] sm:$0xff]  ;;  %v1493_v53 = vadd.f32 %v4464_v52, %v1386_v19  ;;  %v1387_v33 = vadd.f32 %v4476_v58, %v1272_v48  ;;  %v2650_v52 = vld [vmem:[%s4692_s0 + $0x198] sm:$0xff]  ;;  %v1275_v58 = vadd.f32 %v4523_v11, %v4377_v15 }
 0x4d4   :  { %v4556_v41 = vadd.f32 %v1681_v1, %v1598_v38  ;;  %2107 = vmatpush.msra.mxu0 %v4419_v22 }
 0x4d5   :  { %2592 = vmatpush.msrb.mxu2 %v4419_v22  ;;  %2553 = vmatmul.msk.f32.vlgmr.msra.gmra.mxu0 %vm163_vm0, %v2644_v63  ;;  %v1492_v22 = vadd.f32 %v4450_v20, %v1385_v5  ;;  %v2648_v20 = vld [vmem:[%s4692_s0 + $0x190] sm:$0xff]  ;;  %v1494_v42 = vadd.f32 %v4478_v36, %v1387_v33  ;;  %v1388_v29 = vadd.f32 %v4488_v47, %v1275_v58  ;;  %v2652_v36 = vld [vmem:[%s4692_s0 + $0x1a0] sm:$0xff] }
 0x4d6   :  { %2560 = vmatmul.msk.f32.vlgmr.msrb.gmra.mxu2 %vm163_vm0, %v2645_v6  ;;  %v1278_v47 = vadd.f32 %v4523_v11, %v4391_v32 }
 0x4d7   :  { %2530 = vmatmul.msk.f32.gmra.mxu3 %vm163_vm0, %v2646_v9  ;;  %v1495_v15 = vadd.f32 %v4490_v49, %v1388_v29  ;;  %v2654_v49 = vld [vmem:[%s4692_s0 + $0x1a8] sm:$0xff] }
 0x4d8   :  { %v1389_v55 = vadd.f32 %v4500_v7, %v1278_v47  ;;  %v1281_v7 = vadd.f32 %v4523_v11, %v4405_v44 }
 0x4d9   :  { %v1577_v61 = vpop.f32.mrf.mxu3 }
 0x4da   :  { %v1599_v24 = vadd.f32 %v1577_v61, %v1492_v22  ;;  %v1684_v37 = vpop.f32.mrf.mxu0  ;;  %v1496_v32 = vadd.f32 %v4502_v39, %v1389_v55  ;;  %v1390_v50 = vadd.f32 %v4512_v12, %v1281_v7  ;;  %v2656_v39 = vld [vmem:[%s4692_s0 + $0x1b0] sm:$0xff] }
 0x4dc   :  { %v4576_v30 = vadd.f32 %v1684_v37, %v1599_v24  ;;  %v1497_v44 = vadd.f32 %v4514_v28, %v1390_v50 }
 0x4dd   :  { %2554 = vmatmul.msk.f32.gmra.mxu0 %vm163_vm0, %v2647_v17 }
 0x4df   :  { %2531 = vmatmul.msk.f32.gmra.mxu3 %vm163_vm0, %v2648_v20 }
 0x4e1   :  { %v1580_v27 = vpop.f32.mrf.mxu3 }
 0x4e2   :  { %v1600_v31 = vadd.f32 %v1580_v27, %v1493_v53  ;;  %v1687_v57 = vpop.f32.mrf.mxu0 }
 0x4e4   :  { %v4590_v40 = vadd.f32 %v1687_v57, %v1600_v31 }
 0x4e5   :  { %2555 = vmatmul.msk.f32.gmra.mxu0 %vm163_vm0, %v2649_v59 }
 0x4e7   :  { %2532 = vmatmul.msk.f32.gmra.mxu3 %vm163_vm0, %v2650_v52 }
 0x4e9   :  { %v1583_v45 = vpop.f32.mrf.mxu3 }
 0x4ea   :  { %v1601_v46 = vadd.f32 %v1583_v45, %v1494_v42  ;;  %v1690_v34 = vpop.f32.mrf.mxu0 }
 0x4ec   :  { %v4604_v8 = vadd.f32 %v1690_v34, %v1601_v46 }
 0x4ed   :  { %2556 = vmatmul.msk.f32.gmra.mxu0 %vm163_vm0, %v2651_v0 }
 0x4ef   :  { %2533 = vmatmul.msk.f32.gmra.mxu3 %vm163_vm0, %v2652_v36 }
 0x4f1   :  { %v1586_v23 = vpop.f32.mrf.mxu3 }
 0x4f2   :  { %v1602_v35 = vadd.f32 %v1586_v23, %v1495_v15  ;;  %v1693_v54 = vpop.f32.mrf.mxu0 }
 0x4f4   :  { %v4618_v10 = vadd.f32 %v1693_v54, %v1602_v35 }
 0x4f5   :  { %2557 = vmatmul.msk.f32.gmra.mxu0 %vm163_vm0, %v2653_v4 }
 0x4f7   :  { %2534 = vmatmul.msk.f32.gmra.mxu3 %vm163_vm0, %v2654_v49 }
 0x4f9   :  { %v1589_v56 = vpop.f32.mrf.mxu3 }
 0x4fa   :  { %v1603_v16 = vadd.f32 %v1589_v56, %v1496_v32  ;;  %v1696_v26 = vpop.f32.mrf.mxu0 }
 0x4fc   :  { %v4632_v43 = vadd.f32 %v1696_v26, %v1603_v16 }
 0x4fd   :  { %2558 = vmatmul.msk.f32.gmra.mxu0 %vm163_vm0, %v2655_v60 }
 0x4ff   :  { %2535 = vmatmul.msk.f32.gmra.mxu3 %vm163_vm0, %v2656_v39 }
 0x501   :  { %v1592_v11 = vpop.f32.mrf.mxu3 }
 0x502   :  { %v1604_v14 = vadd.f32 %v1592_v11, %v1497_v44  ;;  %v1699_v21 = vpop.f32.mrf.mxu0 }
 0x504   :  { %v4643_v12 = vadd.f32 %v1699_v21, %v1604_v14 }
 0x505   :  { %2559 = vmatmul.msk.f32.gmra.mxu0 %vm163_vm0, %v2657_v18 }
 0x507   :  { %2536 = vmatmul.msk.f32.gmra.mxu3 %vm163_vm0, %v2658_v51 }
 0x509   :  { %v1595_v3 = vpop.f32.mrf.mxu3 }
 0x50a   :  { %v1605_v28 = vadd.f32 %v1595_v3, %v4534_v62  ;;  %v1702_v25 = vpop.f32.mrf.mxu0 }
 0x50c   :  { %v4654_v13 = vadd.f32 %v1702_v25, %v1605_v28 }
 0x511   :  { %v1788_v38 = vpop.f32.mrf.mxu3 }
 0x512   :  { %v1895_v1 = vpop.f32.mrf.mxu0  ;;  %v1812_v62 = vadd.f32 %v1788_v38, %v4556_v41 }
 0x514   :  { %v1919_v48 = vadd.f32 %v1895_v1, %v1812_v62 }
 0x519   :  { %v1791_v5 = vpop.f32.mrf.mxu3 }
 0x51a   :  { %v1898_v63 = vpop.f32.mrf.mxu0  ;;  %v1813_v59 = vadd.f32 %v1791_v5, %v4576_v30 }
 0x51c   :  { %v1920_v42 = vadd.f32 %v1898_v63, %v1813_v59 }
 0x521   :  { %v1794_v6 = vpop.f32.mrf.mxu3 }
 0x522   :  { %v1901_v9 = vpop.f32.mrf.mxu0  ;;  %v1814_v34 = vadd.f32 %v1794_v6, %v4590_v40 }
 0x524   :  { %v1921_v41 = vadd.f32 %v1901_v9, %v1814_v34 }
 0x529   :  { %v1797_v22 = vpop.f32.mrf.mxu3 }
 0x52a   :  { %v1904_v61 = vpop.f32.mrf.mxu0  ;;  %v1815_v15 = vadd.f32 %v1797_v22, %v4604_v8 }
 0x52c   :  { %v1922_v47 = vadd.f32 %v1904_v61, %v1815_v15 }
 0x531   :  { %v1800_v2 = vpop.f32.mrf.mxu3 }
 0x532   :  { %v1907_v24 = vpop.f32.mrf.mxu0  ;;  %v1816_v55 = vadd.f32 %v1800_v2, %v4618_v10 }
 0x534   :  { %v1923_v49 = vadd.f32 %v1907_v24, %v1816_v55 }
 0x539   :  { %v1803_v37 = vpop.f32.mrf.mxu3 }
 0x53a   :  { %v1910_v19 = vpop.f32.mrf.mxu0  ;;  %v1817_v7 = vadd.f32 %v1803_v37, %v4632_v43 }
 0x53c   :  { %v1924_v26 = vadd.f32 %v1910_v19, %v1817_v7 }
 0x541   :  { %v1806_v17 = vpop.f32.mrf.mxu3 }
 0x542   :  { %v1913_v20 = vpop.f32.mrf.mxu0  ;;  %v1818_v39 = vadd.f32 %v1806_v17, %v4643_v12 }
 0x544   :  { %v1925_v11 = vadd.f32 %v1913_v20, %v1818_v39 }
 0x54a   :  { %v1809_v53 = vpop.f32.mrf.mxu3  ;;  %v1916_v27 = vpop.f32.mrf.mxu0 }
 0x54b   :  { %v1819_v18 = vadd.f32 %v1809_v53, %v4654_v13 }
 0x54d   :  { %v1926_v3 = vadd.f32 %v1916_v27, %v1819_v18 }
 0x552   :  { %v2002_v31 = vpop.f32.mrf.mxu3  ;;  %v2109_v57 = vpop.f32.mrf.mxu0 }
 0x553   :  { %v2026_v33 = vadd.f32 %v2002_v31, %v1919_v48 }
 0x555   :  { %v2133_v52 = vadd.f32 %v2109_v57, %v2026_v33 }
 0x557   :  { %2141 = vst [vmem:[%s4696_s8] sm:$0xff] %v2133_v52 }
 0x559   :  { %v2130_v25 = vpop.f32.mrf.mxu2 }
 0x55a   :  { %v2005_v45 = vpop.f32.mrf.mxu3  ;;  %v2112_v58 = vpop.f32.mrf.mxu0 }
 0x55b   :  { %v2027_v46 = vadd.f32 %v2005_v45, %v1920_v42 }
 0x55d   :  { %v2134_v29 = vadd.f32 %v2112_v58, %v2027_v46 }
 0x55f   :  { %2142 = vst [vmem:[%s4696_s8 + $0x8] sm:$0xff] %v2134_v29 }
 0x562   :  { %v2008_v0 = vpop.f32.mrf.mxu3  ;;  %v2115_v36 = vpop.f32.mrf.mxu0 }
 0x563   :  { %v2028_v30 = vadd.f32 %v2008_v0, %v1921_v41 }
 0x565   :  { %v2135_v23 = vadd.f32 %v2115_v36, %v2028_v30 }
 0x567   :  { %2143 = vst [vmem:[%s4696_s8 + $0x10] sm:$0xff] %v2135_v23 }
 0x56a   :  { %v2011_v35 = vpop.f32.mrf.mxu3  ;;  %v2118_v54 = vpop.f32.mrf.mxu0 }
 0x56b   :  { %v2029_v40 = vadd.f32 %v2011_v35, %v1922_v47 }
 0x56d   :  { %v2136_v4 = vadd.f32 %v2118_v54, %v2029_v40 }
 0x56f   :  { %2144 = vst [vmem:[%s4696_s8 + $0x18] sm:$0xff] %v2136_v4 }
 0x572   :  { %v2014_v32 = vpop.f32.mrf.mxu3  ;;  %v2121_v56 = vpop.f32.mrf.mxu0 }
 0x573   :  { %v2030_v8 = vadd.f32 %v2014_v32, %v1923_v49 }
 0x575   :  { %v2137_v16 = vadd.f32 %v2121_v56, %v2030_v8 }
 0x577   :  { %2145 = vst [vmem:[%s4696_s8 + $0x20] sm:$0xff] %v2137_v16 }
 0x57a   :  { %v2017_v50 = vpop.f32.mrf.mxu3  ;;  %v2124_v60 = vpop.f32.mrf.mxu0 }
 0x57b   :  { %v2031_v10 = vadd.f32 %v2017_v50, %v1924_v26 }
 0x57d   :  { %v2138_v44 = vadd.f32 %v2124_v60, %v2031_v10 }
 0x57f   :  { %2146 = vst [vmem:[%s4696_s8 + $0x28] sm:$0xff] %v2138_v44 }
 0x582   :  { %v2020_v14 = vpop.f32.mrf.mxu3  ;;  %v2127_v21 = vpop.f32.mrf.mxu0 }
 0x583   :  { %v2032_v43 = vadd.f32 %v2020_v14, %v1925_v11 }
 0x585   :  { %v2139_v51 = vadd.f32 %v2127_v21, %v2032_v43 }
 0x587   :  { %2147 = vst [vmem:[%s4696_s8 + $0x30] sm:$0xff] %v2139_v51 }
 0x58a   :  { %v2023_v28 = vpop.f32.mrf.mxu3 }
 0x58b   :  { %v2033_v12 = vadd.f32 %v2023_v28, %v1926_v3 }
 0x58d   :  { %v2140_v38 = vadd.f32 %v2130_v25, %v2033_v12 }
 0x58f   :  { %2148 = vst [vmem:[%s4696_s8 + $0x38] sm:$0xff] %v2140_v38 }

</bundles_post_ra>
